<compile_context>
chip_gen: v7x
topology: tpu7x:2x2x1
jax: 0.10.0
libtpu: 0.0.40
codegen_flags: <defaults>
</compile_context>

<pallas_src>
import functools

import jax
import jax.numpy as jnp
from jax.experimental import pallas as pl
from jax.experimental.pallas import tpu as pltpu


def encoder_layer_kernel(x_ref, wqkv_ref, wo_ref, w1_ref, b1_ref, w2_ref, b2_ref,
                         g1_ref, be1_ref, g2_ref, be2_ref, o_ref, *, heads_num):
    Bt, S, D = x_ref.shape
    M = Bt * S
    kd = D // heads_num

    # Hoist small parameters once.
    b1 = b1_ref[...]
    b2 = b2_ref[...]
    g1 = g1_ref[...]
    be1 = be1_ref[...]
    g2 = g2_ref[...]
    be2 = be2_ref[...]

    # (Bt, S, D) -> (M, D): leading-dim merge, layout-preserving since S % 8 == 0
    # (asserted by the wrapper), so this reshape is free.
    x = x_ref[...].astype(jnp.float32).reshape(M, D)
    xb = x.astype(jnp.bfloat16)

    # Fused QKV projection: one wide (M, D) @ (D, 3D) bf16 matmul, f32 accumulate.
    # The 1/sqrt(kd) attention scale is pre-folded into the Q columns of wqkv.
    qkv = jnp.dot(xb, wqkv_ref[...], preferred_element_type=jnp.float32)  # (M, 3D)

    q = qkv[:, :D].astype(jnp.bfloat16).reshape(Bt, S, D)
    k = qkv[:, D:2 * D].astype(jnp.bfloat16).reshape(Bt, S, D)
    v = qkv[:, 2 * D:].astype(jnp.bfloat16).reshape(Bt, S, D)

    # Per-head attention with the output projection folded in:
    #   concat_h(head_h) @ Wo == sum_h head_h @ Wo[h*kd:(h+1)*kd, :]
    # so head outputs accumulate straight into a full-width (M, D) f32 value:
    # no narrow (kd-lane) masked scratch stores and no concat of head slices.
    # TODO(synk): replace the unrolled head loop with one head-batched matmul
    # (+ flash-style KV tiling) at real shapes; Mosaic dot_general supports a
    # single leading batch dim only, so heads are unrolled at this toy size.
    attn = jnp.zeros((M, D), jnp.float32)
    for h in range(heads_num):
        cs = slice(h * kd, (h + 1) * kd)
        qh = q[:, :, cs]                                        # (Bt, S, kd) bf16
        kh = k[:, :, cs]
        vh = v[:, :, cs]
        s = jnp.einsum("bqd,bkd->bqk", qh, kh,
                       preferred_element_type=jnp.float32)      # (Bt, S, S) f32
        s = s - jnp.max(s, axis=-1, keepdims=True)
        p = jnp.exp(s)
        denom = jnp.sum(p, axis=-1, keepdims=True)
        p = p * pl.reciprocal(denom, approx=True)               # EUP, not VALU div
        oh = jnp.einsum("bqk,bkd->bqd", p.astype(jnp.bfloat16), vh,
                        preferred_element_type=jnp.float32)     # (Bt, S, kd) f32
        oh2 = oh.reshape(M, kd).astype(jnp.bfloat16)            # leading-dim merge
        attn = attn + jnp.dot(oh2, wo_ref[h],                   # wo_ref: (H, kd, D)
                              preferred_element_type=jnp.float32)

    # TODO(synk): nn.Dropout layers omitted (identity / inference semantics);
    # src_mask is None on this path.

    def layer_norm(z, gamma, beta, eps=1e-5):
        mu = jnp.mean(z, axis=-1, keepdims=True)
        zc = z - mu
        var = jnp.mean(zc * zc, axis=-1, keepdims=True)
        return zc * jax.lax.rsqrt(var + eps) * gamma + beta

    # Residual + LayerNorm 1 (f32 elementwise; v5e has no bf16 VPU path).
    h1 = layer_norm(x + attn, g1, be1)                          # (M, D) f32

    # FeedForward: Linear -> ReLU -> Linear (bf16 matmul operands, f32 acc).
    # TODO(synk): tile over d_ff (extra "arbitrary" grid axis) for large d_ff.
    ff = jnp.dot(h1.astype(jnp.bfloat16), w1_ref[...],
                 preferred_element_type=jnp.float32) + b1       # (M, d_ff) f32
    ff = jnp.maximum(ff, 0.0).astype(jnp.bfloat16)
    ff = jnp.dot(ff, w2_ref[...],
                 preferred_element_type=jnp.float32) + b2       # (M, D) f32

    # Residual + LayerNorm 2.
    h2 = layer_norm(h1 + ff, g2, be2)
    o_ref[...] = h2.reshape(Bt, S, D).astype(o_ref.dtype)


def _vmem_limit_bytes(block_b, S, D, d_ff):
    """Rough per-grid-step VMEM need (weights + activation slab) with headroom."""
    M = block_b * S
    weights = 2 * (3 * D * D + D * D + D * d_ff + d_ff * D)     # bf16, single buffer
    small = 4 * (2 * d_ff + 6 * D)                              # biases / LN params f32
    acts = (4 * M * D                                           # x (f32)
            + 4 * M * 3 * D + 2 * M * 3 * D                     # qkv f32 + q/k/v bf16
            + 2 * 4 * block_b * S * S                           # scores + probs (1 head live)
            + 3 * 4 * M * D                                     # attn, h1, h2 (f32)
            + 6 * M * d_ff)                                     # ff f32 + bf16
    io = 2 * 2 * 4 * block_b * S * D                            # double-buffered x / out
    est = 2 * (weights + small + acts + io)                     # 2x compiler-temp headroom
    # Clamp: never below the safe default, well under v7x's 64 MiB physical VMEM.
    return int(min(max(est, 32 * 1024 * 1024), 48 * 1024 * 1024))


def encoder_layer(x, params, heads_num, *, block_b=None):
    B, S, D = x.shape
    assert D % heads_num == 0, "d_model must be divisible by heads_num"
    assert S % 8 == 0, "S must be a multiple of 8 for layout-preserving reshapes"
    d_ff = params["w1"].shape[1]
    kd = D // heads_num
    scale = 1.0 / (kd ** 0.5)

    if block_b is None:
        # >= 2 parallel grid steps so both v7x TensorCores get work
        # (largest divisor of B that is <= B // 2); single step only if B == 1.
        block_b = B
        for cand in range(B // 2, 0, -1):
            if B % cand == 0:
                block_b = cand
                break
        # TODO(synk): for realistic shapes also bound block_b (and add S / d_ff
        # tile axes) so the per-step slab stays under ~0.5 * 64 MiB on v7x.
    assert B % block_b == 0

    # Fuse Q/K/V weights into one (D, 3D) matrix, fold the attention scale into
    # the Q columns, cast matmul weights to bf16 (f32 accumulate in-kernel), and
    # expose Wo per-head as (H, kd, D) so the head merge folds into the matmul.
    wqkv = jnp.concatenate(
        [params["wq"] * scale, params["wk"], params["wv"]], axis=1
    ).astype(jnp.bfloat16)
    wo = params["wo"].astype(jnp.bfloat16).reshape(heads_num, kd, D)
    w1 = params["w1"].astype(jnp.bfloat16)
    w2 = params["w2"].astype(jnp.bfloat16)

    kernel = functools.partial(encoder_layer_kernel, heads_num=heads_num)
    vmem_limit = _vmem_limit_bytes(block_b, S, D, d_ff)

    def build(single_buffer_weights):
        pm = pl.Buffered(1) if single_buffer_weights else None

        def resident(shape):
            # Weights / small params: constant index_map -> resident in VMEM;
            # Buffered(1) drops the pointless second pipeline buffer.
            idx = lambda b: (0,) * len(shape)
            if pm is None:
                return pl.BlockSpec(shape, idx)
            return pl.BlockSpec(shape, idx, pipeline_mode=pm)

        return pl.pallas_call(
            kernel,
            out_shape=jax.ShapeDtypeStruct((B, S, D), x.dtype),
            grid=(B // block_b,),
            in_specs=[
                pl.BlockSpec((block_b, S, D), lambda b: (b, 0, 0)),   # x
                resident((D, 3 * D)),                                 # wqkv (bf16)
                resident((heads_num, kd, D)),                         # wo   (bf16, per-head)
                resident((D, d_ff)), resident((1, d_ff)),             # w1 (bf16), b1
                resident((d_ff, D)), resident((1, D)),                # w2 (bf16), b2
                resident((1, D)), resident((1, D)),                   # ln1 gamma, beta
                resident((1, D)), resident((1, D)),                   # ln2 gamma, beta
            ],
            out_specs=pl.BlockSpec((block_b, S, D), lambda b: (b, 0, 0)),
            compiler_params=pltpu.CompilerParams(
                dimension_semantics=("parallel",),
                vmem_limit_bytes=vmem_limit),
        )(x, wqkv, wo, w1, params["b1"], w2, params["b2"],
          params["g1"], params["be1"], params["g2"], params["be2"])

    try:
        return jax.block_until_ready(build(True))
    except Exception:
        # Fallback if this JAX build rejects pipeline_mode=pl.Buffered(1) on a
        # pallas_call BlockSpec; identical semantics, default double buffering.
        return jax.block_until_ready(build(False))


def reference_encoder_layer(x, params, heads_num):
    """Pure-JAX f32 reference mirroring the PyTorch semantics."""
    B, S, D = x.shape
    k_num = D // heads_num
    q = x @ params["wq"]
    k = x @ params["wk"]
    v = x @ params["wv"]

    def split(t):  # (B,S,D) -> (B,H,S,Kd)
        return t.reshape(B, S, heads_num, k_num).transpose(0, 2, 1, 3)

    qh, kh, vh = split(q), split(k), split(v)
    s = jnp.einsum("bhqd,bhkd->bhqk", qh, kh) / (k_num ** 0.5)
    p = jax.nn.softmax(s, axis=-1)
    attn = jnp.einsum("bhqk,bhkd->bhqd", p, vh)
    attn = attn.transpose(0, 2, 1, 3).reshape(B, S, D) @ params["wo"]

    def layer_norm(z, gamma, beta, eps=1e-5):
        mu = jnp.mean(z, axis=-1, keepdims=True)
        var = jnp.mean((z - mu) ** 2, axis=-1, keepdims=True)
        return (z - mu) * jax.lax.rsqrt(var + eps) * gamma + beta

    h1 = layer_norm(x + attn, params["g1"], params["be1"])
    ff = jnp.maximum(h1 @ params["w1"] + params["b1"], 0.0) @ params["w2"] + params["b2"]
    return layer_norm(h1 + ff, params["g2"], params["be2"])


if __name__ == "__main__":
    B, S, D, H, DFF = 2, 8, 32, 4, 64

    keys = jax.random.split(jax.random.PRNGKey(0), 9)
    params = {
        # Linear weights stored as [in, out] (already transposed vs PyTorch).
        "wq": jax.random.normal(keys[0], (D, D), jnp.float32) * 0.1,
        "wk": jax.random.normal(keys[1], (D, D), jnp.float32) * 0.1,
        "wv": jax.random.normal(keys[2], (D, D), jnp.float32) * 0.1,
        "wo": jax.random.normal(keys[3], (D, D), jnp.float32) * 0.1,
        "w1": jax.random.normal(keys[4], (D, DFF), jnp.float32) * 0.1,
        "b1": jax.random.normal(keys[5], (1, DFF), jnp.float32) * 0.1,
        "w2": jax.random.normal(keys[6], (DFF, D), jnp.float32) * 0.1,
        "b2": jax.random.normal(keys[7], (1, D), jnp.float32) * 0.1,
        # LayerNorm params: PyTorch defaults (gamma=1, beta=0).
        "g1": jnp.ones((1, D), jnp.float32),
        "be1": jnp.zeros((1, D), jnp.float32),
        "g2": jnp.ones((1, D), jnp.float32),
        "be2": jnp.zeros((1, D), jnp.float32),
    }
    x = jax.random.normal(keys[8], (B, S, D), jnp.float32)

    out = jax.block_until_ready(encoder_layer(x, params, heads_num=H))

    ref = reference_encoder_layer(x, params, heads_num=H)
    assert out.shape == (B, S, D)
    # Tolerance accounts for bf16 matmul operands + approx reciprocal in the
    # kernel vs the full-f32 reference.
    assert jnp.allclose(out, ref, atol=5e-2, rtol=5e-2), "mismatch vs JAX reference"

    print("KERNEL_OK")
</pallas_src>

<mosaic_0001>
module attributes {stable_mosaic.version = 11 : i64} {
  func.func @encoder_layer_kernel(%arg0: i32, %arg1: memref<1x8x32xf32, #tpu.memory_space<vmem>>, %arg2: memref<32x96xbf16, #tpu.memory_space<vmem>>, %arg3: memref<4x8x32xbf16, #tpu.memory_space<vmem>>, %arg4: memref<32x64xbf16, #tpu.memory_space<vmem>>, %arg5: memref<1x64xf32, #tpu.memory_space<vmem>>, %arg6: memref<64x32xbf16, #tpu.memory_space<vmem>>, %arg7: memref<1x32xf32, #tpu.memory_space<vmem>>, %arg8: memref<1x32xf32, #tpu.memory_space<vmem>>, %arg9: memref<1x32xf32, #tpu.memory_space<vmem>>, %arg10: memref<1x32xf32, #tpu.memory_space<vmem>>, %arg11: memref<1x32xf32, #tpu.memory_space<vmem>>, %arg12: memref<1x8x32xf32, #tpu.memory_space<vmem>>) attributes {dimension_semantics = [#tpu.dimension_semantics<parallel>], iteration_bounds = array<i64: 2>, scalar_prefetch = 0 : i64, scratch_operands = 0 : i64, tpu.core_type = #tpu.core_type<tc>, window_params = [{transform_indices = @transform_0, window_bounds = array<i64: 1, 8, 32>}, {pipeline_mode = #tpu.pipeline_mode<synchronous>, transform_indices = @transform_1, window_bounds = array<i64: 32, 96>}, {pipeline_mode = #tpu.pipeline_mode<synchronous>, transform_indices = @transform_2, window_bounds = array<i64: 4, 8, 32>}, {pipeline_mode = #tpu.pipeline_mode<synchronous>, transform_indices = @transform_3, window_bounds = array<i64: 32, 64>}, {pipeline_mode = #tpu.pipeline_mode<synchronous>, transform_indices = @transform_4, window_bounds = array<i64: 1, 64>}, {pipeline_mode = #tpu.pipeline_mode<synchronous>, transform_indices = @transform_5, window_bounds = array<i64: 64, 32>}, {pipeline_mode = #tpu.pipeline_mode<synchronous>, transform_indices = @transform_6, window_bounds = array<i64: 1, 32>}, {pipeline_mode = #tpu.pipeline_mode<synchronous>, transform_indices = @transform_7, window_bounds = array<i64: 1, 32>}, {pipeline_mode = #tpu.pipeline_mode<synchronous>, transform_indices = @transform_8, window_bounds = array<i64: 1, 32>}, {pipeline_mode = #tpu.pipeline_mode<synchronous>, transform_indices = @transform_9, window_bounds = array<i64: 1, 32>}, {pipeline_mode = #tpu.pipeline_mode<synchronous>, transform_indices = @transform_10, window_bounds = array<i64: 1, 32>}, {transform_indices = @transform_11, window_bounds = array<i64: 1, 8, 32>}]} {
    %c0 = arith.constant 0 : index
    %c0_0 = arith.constant 0 : index
    %0 = vector.load %arg5[%c0, %c0_0] : memref<1x64xf32, #tpu.memory_space<vmem>>, vector<1x64xf32>
    %c0_1 = arith.constant 0 : index
    %c0_2 = arith.constant 0 : index
    %1 = vector.load %arg7[%c0_1, %c0_2] : memref<1x32xf32, #tpu.memory_space<vmem>>, vector<1x32xf32>
    %c0_3 = arith.constant 0 : index
    %c0_4 = arith.constant 0 : index
    %2 = vector.load %arg8[%c0_3, %c0_4] : memref<1x32xf32, #tpu.memory_space<vmem>>, vector<1x32xf32>
    %c0_5 = arith.constant 0 : index
    %c0_6 = arith.constant 0 : index
    %3 = vector.load %arg9[%c0_5, %c0_6] : memref<1x32xf32, #tpu.memory_space<vmem>>, vector<1x32xf32>
    %c0_7 = arith.constant 0 : index
    %c0_8 = arith.constant 0 : index
    %4 = vector.load %arg10[%c0_7, %c0_8] : memref<1x32xf32, #tpu.memory_space<vmem>>, vector<1x32xf32>
    %c0_9 = arith.constant 0 : index
    %c0_10 = arith.constant 0 : index
    %5 = vector.load %arg11[%c0_9, %c0_10] : memref<1x32xf32, #tpu.memory_space<vmem>>, vector<1x32xf32>
    %c0_11 = arith.constant 0 : index
    %c0_12 = arith.constant 0 : index
    %c0_13 = arith.constant 0 : index
    %6 = vector.load %arg1[%c0_11, %c0_12, %c0_13] : memref<1x8x32xf32, #tpu.memory_space<vmem>>, vector<1x8x32xf32>
    %7 = vector.shape_cast %6 : vector<1x8x32xf32> to vector<8x32xf32>
    %8 = arith.truncf %7 : vector<8x32xf32> to vector<8x32xbf16>
    %c0_14 = arith.constant 0 : index
    %c0_15 = arith.constant 0 : index
    %9 = vector.load %arg2[%c0_14, %c0_15] : memref<32x96xbf16, #tpu.memory_space<vmem>>, vector<32x96xbf16>
    %cst = arith.constant dense<0.000000e+00> : vector<8x96xf32>
    %10 = tpu.matmul %8, %9, %cst {dimension_numbers = #tpu.dot_dimension_numbers<[1], [0], [0], [1], [0, 0, 1, 1], [], []>} : vector<8x32xbf16>, vector<32x96xbf16>, vector<8x96xf32> -> vector<8x96xf32>
    %11 = vector.extract_strided_slice %10 {offsets = [0, 0], sizes = [8, 32], strides = [1, 1]} : vector<8x96xf32> to vector<8x32xf32>
    %12 = arith.truncf %11 : vector<8x32xf32> to vector<8x32xbf16>
    %13 = vector.shape_cast %12 : vector<8x32xbf16> to vector<1x8x32xbf16>
    %14 = vector.extract_strided_slice %10 {offsets = [0, 32], sizes = [8, 32], strides = [1, 1]} : vector<8x96xf32> to vector<8x32xf32>
    %15 = arith.truncf %14 : vector<8x32xf32> to vector<8x32xbf16>
    %16 = vector.shape_cast %15 : vector<8x32xbf16> to vector<1x8x32xbf16>
    %17 = vector.extract_strided_slice %10 {offsets = [0, 64], sizes = [8, 32], strides = [1, 1]} : vector<8x96xf32> to vector<8x32xf32>
    %18 = arith.truncf %17 : vector<8x32xf32> to vector<8x32xbf16>
    %19 = vector.shape_cast %18 : vector<8x32xbf16> to vector<1x8x32xbf16>
    %cst_16 = arith.constant 0.000000e+00 : f32
    %20 = vector.broadcast %cst_16 : f32 to vector<8x32xf32>
    %21 = vector.extract_strided_slice %13 {offsets = [0, 0, 0], sizes = [1, 8, 8], strides = [1, 1, 1]} : vector<1x8x32xbf16> to vector<1x8x8xbf16>
    %22 = vector.extract_strided_slice %16 {offsets = [0, 0, 0], sizes = [1, 8, 8], strides = [1, 1, 1]} : vector<1x8x32xbf16> to vector<1x8x8xbf16>
    %23 = vector.extract_strided_slice %19 {offsets = [0, 0, 0], sizes = [1, 8, 8], strides = [1, 1, 1]} : vector<1x8x32xbf16> to vector<1x8x8xbf16>
    "tpu.trace_start"() <{level = 10 : i32, message = "bqd,bkd->bqk"}> : () -> ()
    %cst_17 = arith.constant dense<0.000000e+00> : vector<1x8x8xf32>
    %24 = tpu.matmul %21, %22, %cst_17 {dimension_numbers = #tpu.dot_dimension_numbers<[2], [2], [1], [1], [0, 0, 0, 1, 1, 1], [0], [0]>} : vector<1x8x8xbf16>, vector<1x8x8xbf16>, vector<1x8x8xf32> -> vector<1x8x8xf32>
    "tpu.trace_stop"() : () -> ()
    %cst_18 = arith.constant dense<0xFF800000> : vector<1x8xf32>
    %25 = vector.multi_reduction <maximumf>, %24, %cst_18 [2] : vector<1x8x8xf32> to vector<1x8xf32>
    %26 = vector.shape_cast %25 : vector<1x8xf32> to vector<1x8x1xf32>
    %27 = vector.broadcast %26 : vector<1x8x1xf32> to vector<1x8x8xf32>
    %28 = arith.subf %24, %27 : vector<1x8x8xf32>
    %29 = math.exp %28 : vector<1x8x8xf32>
    %cst_19 = arith.constant dense<0.000000e+00> : vector<1x8xf32>
    %30 = vector.multi_reduction <add>, %29, %cst_19 [2] : vector<1x8x8xf32> to vector<1x8xf32>
    %31 = vector.shape_cast %30 : vector<1x8xf32> to vector<1x8x1xf32>
    %32 = tpu.reciprocal %31 {approx = true} : vector<1x8x1xf32> -> vector<1x8x1xf32>
    %33 = vector.broadcast %32 : vector<1x8x1xf32> to vector<1x8x8xf32>
    %34 = arith.mulf %29, %33 : vector<1x8x8xf32>
    %35 = arith.truncf %34 : vector<1x8x8xf32> to vector<1x8x8xbf16>
    "tpu.trace_start"() <{level = 10 : i32, message = "bqk,bkd->bqd"}> : () -> ()
    %cst_20 = arith.constant dense<0.000000e+00> : vector<1x8x8xf32>
    %36 = tpu.matmul %35, %23, %cst_20 {dimension_numbers = #tpu.dot_dimension_numbers<[2], [1], [1], [2], [0, 0, 0, 1, 1, 2], [0], [0]>} : vector<1x8x8xbf16>, vector<1x8x8xbf16>, vector<1x8x8xf32> -> vector<1x8x8xf32>
    "tpu.trace_stop"() : () -> ()
    %37 = vector.shape_cast %36 : vector<1x8x8xf32> to vector<8x8xf32>
    %38 = arith.truncf %37 : vector<8x8xf32> to vector<8x8xbf16>
    %c0_21 = arith.constant 0 : index
    %c0_22 = arith.constant 0 : index
    %c0_23 = arith.constant 0 : index
    %39 = vector.load %arg3[%c0_21, %c0_22, %c0_23] : memref<4x8x32xbf16, #tpu.memory_space<vmem>>, vector<1x8x32xbf16>
    %40 = vector.shape_cast %39 : vector<1x8x32xbf16> to vector<8x32xbf16>
    %cst_24 = arith.constant dense<0.000000e+00> : vector<8x32xf32>
    %41 = tpu.matmul %38, %40, %cst_24 {dimension_numbers = #tpu.dot_dimension_numbers<[1], [0], [0], [1], [0, 0, 1, 1], [], []>} : vector<8x8xbf16>, vector<8x32xbf16>, vector<8x32xf32> -> vector<8x32xf32>
    %42 = arith.addf %20, %41 : vector<8x32xf32>
    %43 = vector.extract_strided_slice %13 {offsets = [0, 0, 8], sizes = [1, 8, 8], strides = [1, 1, 1]} : vector<1x8x32xbf16> to vector<1x8x8xbf16>
    %44 = vector.extract_strided_slice %16 {offsets = [0, 0, 8], sizes = [1, 8, 8], strides = [1, 1, 1]} : vector<1x8x32xbf16> to vector<1x8x8xbf16>
    %45 = vector.extract_strided_slice %19 {offsets = [0, 0, 8], sizes = [1, 8, 8], strides = [1, 1, 1]} : vector<1x8x32xbf16> to vector<1x8x8xbf16>
    "tpu.trace_start"() <{level = 10 : i32, message = "bqd,bkd->bqk"}> : () -> ()
    %cst_25 = arith.constant dense<0.000000e+00> : vector<1x8x8xf32>
    %46 = tpu.matmul %43, %44, %cst_25 {dimension_numbers = #tpu.dot_dimension_numbers<[2], [2], [1], [1], [0, 0, 0, 1, 1, 1], [0], [0]>} : vector<1x8x8xbf16>, vector<1x8x8xbf16>, vector<1x8x8xf32> -> vector<1x8x8xf32>
    "tpu.trace_stop"() : () -> ()
    %cst_26 = arith.constant dense<0xFF800000> : vector<1x8xf32>
    %47 = vector.multi_reduction <maximumf>, %46, %cst_26 [2] : vector<1x8x8xf32> to vector<1x8xf32>
    %48 = vector.shape_cast %47 : vector<1x8xf32> to vector<1x8x1xf32>
    %49 = vector.broadcast %48 : vector<1x8x1xf32> to vector<1x8x8xf32>
    %50 = arith.subf %46, %49 : vector<1x8x8xf32>
    %51 = math.exp %50 : vector<1x8x8xf32>
    %cst_27 = arith.constant dense<0.000000e+00> : vector<1x8xf32>
    %52 = vector.multi_reduction <add>, %51, %cst_27 [2] : vector<1x8x8xf32> to vector<1x8xf32>
    %53 = vector.shape_cast %52 : vector<1x8xf32> to vector<1x8x1xf32>
    %54 = tpu.reciprocal %53 {approx = true} : vector<1x8x1xf32> -> vector<1x8x1xf32>
    %55 = vector.broadcast %54 : vector<1x8x1xf32> to vector<1x8x8xf32>
    %56 = arith.mulf %51, %55 : vector<1x8x8xf32>
    %57 = arith.truncf %56 : vector<1x8x8xf32> to vector<1x8x8xbf16>
    "tpu.trace_start"() <{level = 10 : i32, message = "bqk,bkd->bqd"}> : () -> ()
    %cst_28 = arith.constant dense<0.000000e+00> : vector<1x8x8xf32>
    %58 = tpu.matmul %57, %45, %cst_28 {dimension_numbers = #tpu.dot_dimension_numbers<[2], [1], [1], [2], [0, 0, 0, 1, 1, 2], [0], [0]>} : vector<1x8x8xbf16>, vector<1x8x8xbf16>, vector<1x8x8xf32> -> vector<1x8x8xf32>
    "tpu.trace_stop"() : () -> ()
    %59 = vector.shape_cast %58 : vector<1x8x8xf32> to vector<8x8xf32>
    %60 = arith.truncf %59 : vector<8x8xf32> to vector<8x8xbf16>
    %c1 = arith.constant 1 : index
    %c0_29 = arith.constant 0 : index
    %c0_30 = arith.constant 0 : index
    %61 = vector.load %arg3[%c1, %c0_29, %c0_30] : memref<4x8x32xbf16, #tpu.memory_space<vmem>>, vector<1x8x32xbf16>
    %62 = vector.shape_cast %61 : vector<1x8x32xbf16> to vector<8x32xbf16>
    %cst_31 = arith.constant dense<0.000000e+00> : vector<8x32xf32>
    %63 = tpu.matmul %60, %62, %cst_31 {dimension_numbers = #tpu.dot_dimension_numbers<[1], [0], [0], [1], [0, 0, 1, 1], [], []>} : vector<8x8xbf16>, vector<8x32xbf16>, vector<8x32xf32> -> vector<8x32xf32>
    %64 = arith.addf %42, %63 : vector<8x32xf32>
    %65 = vector.extract_strided_slice %13 {offsets = [0, 0, 16], sizes = [1, 8, 8], strides = [1, 1, 1]} : vector<1x8x32xbf16> to vector<1x8x8xbf16>
    %66 = vector.extract_strided_slice %16 {offsets = [0, 0, 16], sizes = [1, 8, 8], strides = [1, 1, 1]} : vector<1x8x32xbf16> to vector<1x8x8xbf16>
    %67 = vector.extract_strided_slice %19 {offsets = [0, 0, 16], sizes = [1, 8, 8], strides = [1, 1, 1]} : vector<1x8x32xbf16> to vector<1x8x8xbf16>
    "tpu.trace_start"() <{level = 10 : i32, message = "bqd,bkd->bqk"}> : () -> ()
    %cst_32 = arith.constant dense<0.000000e+00> : vector<1x8x8xf32>
    %68 = tpu.matmul %65, %66, %cst_32 {dimension_numbers = #tpu.dot_dimension_numbers<[2], [2], [1], [1], [0, 0, 0, 1, 1, 1], [0], [0]>} : vector<1x8x8xbf16>, vector<1x8x8xbf16>, vector<1x8x8xf32> -> vector<1x8x8xf32>
    "tpu.trace_stop"() : () -> ()
    %cst_33 = arith.constant dense<0xFF800000> : vector<1x8xf32>
    %69 = vector.multi_reduction <maximumf>, %68, %cst_33 [2] : vector<1x8x8xf32> to vector<1x8xf32>
    %70 = vector.shape_cast %69 : vector<1x8xf32> to vector<1x8x1xf32>
    %71 = vector.broadcast %70 : vector<1x8x1xf32> to vector<1x8x8xf32>
    %72 = arith.subf %68, %71 : vector<1x8x8xf32>
    %73 = math.exp %72 : vector<1x8x8xf32>
    %cst_34 = arith.constant dense<0.000000e+00> : vector<1x8xf32>
    %74 = vector.multi_reduction <add>, %73, %cst_34 [2] : vector<1x8x8xf32> to vector<1x8xf32>
    %75 = vector.shape_cast %74 : vector<1x8xf32> to vector<1x8x1xf32>
    %76 = tpu.reciprocal %75 {approx = true} : vector<1x8x1xf32> -> vector<1x8x1xf32>
    %77 = vector.broadcast %76 : vector<1x8x1xf32> to vector<1x8x8xf32>
    %78 = arith.mulf %73, %77 : vector<1x8x8xf32>
    %79 = arith.truncf %78 : vector<1x8x8xf32> to vector<1x8x8xbf16>
    "tpu.trace_start"() <{level = 10 : i32, message = "bqk,bkd->bqd"}> : () -> ()
    %cst_35 = arith.constant dense<0.000000e+00> : vector<1x8x8xf32>
    %80 = tpu.matmul %79, %67, %cst_35 {dimension_numbers = #tpu.dot_dimension_numbers<[2], [1], [1], [2], [0, 0, 0, 1, 1, 2], [0], [0]>} : vector<1x8x8xbf16>, vector<1x8x8xbf16>, vector<1x8x8xf32> -> vector<1x8x8xf32>
    "tpu.trace_stop"() : () -> ()
    %81 = vector.shape_cast %80 : vector<1x8x8xf32> to vector<8x8xf32>
    %82 = arith.truncf %81 : vector<8x8xf32> to vector<8x8xbf16>
    %c2 = arith.constant 2 : index
    %c0_36 = arith.constant 0 : index
    %c0_37 = arith.constant 0 : index
    %83 = vector.load %arg3[%c2, %c0_36, %c0_37] : memref<4x8x32xbf16, #tpu.memory_space<vmem>>, vector<1x8x32xbf16>
    %84 = vector.shape_cast %83 : vector<1x8x32xbf16> to vector<8x32xbf16>
    %cst_38 = arith.constant dense<0.000000e+00> : vector<8x32xf32>
    %85 = tpu.matmul %82, %84, %cst_38 {dimension_numbers = #tpu.dot_dimension_numbers<[1], [0], [0], [1], [0, 0, 1, 1], [], []>} : vector<8x8xbf16>, vector<8x32xbf16>, vector<8x32xf32> -> vector<8x32xf32>
    %86 = arith.addf %64, %85 : vector<8x32xf32>
    %87 = vector.extract_strided_slice %13 {offsets = [0, 0, 24], sizes = [1, 8, 8], strides = [1, 1, 1]} : vector<1x8x32xbf16> to vector<1x8x8xbf16>
    %88 = vector.extract_strided_slice %16 {offsets = [0, 0, 24], sizes = [1, 8, 8], strides = [1, 1, 1]} : vector<1x8x32xbf16> to vector<1x8x8xbf16>
    %89 = vector.extract_strided_slice %19 {offsets = [0, 0, 24], sizes = [1, 8, 8], strides = [1, 1, 1]} : vector<1x8x32xbf16> to vector<1x8x8xbf16>
    "tpu.trace_start"() <{level = 10 : i32, message = "bqd,bkd->bqk"}> : () -> ()
    %cst_39 = arith.constant dense<0.000000e+00> : vector<1x8x8xf32>
    %90 = tpu.matmul %87, %88, %cst_39 {dimension_numbers = #tpu.dot_dimension_numbers<[2], [2], [1], [1], [0, 0, 0, 1, 1, 1], [0], [0]>} : vector<1x8x8xbf16>, vector<1x8x8xbf16>, vector<1x8x8xf32> -> vector<1x8x8xf32>
    "tpu.trace_stop"() : () -> ()
    %cst_40 = arith.constant dense<0xFF800000> : vector<1x8xf32>
    %91 = vector.multi_reduction <maximumf>, %90, %cst_40 [2] : vector<1x8x8xf32> to vector<1x8xf32>
    %92 = vector.shape_cast %91 : vector<1x8xf32> to vector<1x8x1xf32>
    %93 = vector.broadcast %92 : vector<1x8x1xf32> to vector<1x8x8xf32>
    %94 = arith.subf %90, %93 : vector<1x8x8xf32>
    %95 = math.exp %94 : vector<1x8x8xf32>
    %cst_41 = arith.constant dense<0.000000e+00> : vector<1x8xf32>
    %96 = vector.multi_reduction <add>, %95, %cst_41 [2] : vector<1x8x8xf32> to vector<1x8xf32>
    %97 = vector.shape_cast %96 : vector<1x8xf32> to vector<1x8x1xf32>
    %98 = tpu.reciprocal %97 {approx = true} : vector<1x8x1xf32> -> vector<1x8x1xf32>
    %99 = vector.broadcast %98 : vector<1x8x1xf32> to vector<1x8x8xf32>
    %100 = arith.mulf %95, %99 : vector<1x8x8xf32>
    %101 = arith.truncf %100 : vector<1x8x8xf32> to vector<1x8x8xbf16>
    "tpu.trace_start"() <{level = 10 : i32, message = "bqk,bkd->bqd"}> : () -> ()
    %cst_42 = arith.constant dense<0.000000e+00> : vector<1x8x8xf32>
    %102 = tpu.matmul %101, %89, %cst_42 {dimension_numbers = #tpu.dot_dimension_numbers<[2], [1], [1], [2], [0, 0, 0, 1, 1, 2], [0], [0]>} : vector<1x8x8xbf16>, vector<1x8x8xbf16>, vector<1x8x8xf32> -> vector<1x8x8xf32>
    "tpu.trace_stop"() : () -> ()
    %103 = vector.shape_cast %102 : vector<1x8x8xf32> to vector<8x8xf32>
    %104 = arith.truncf %103 : vector<8x8xf32> to vector<8x8xbf16>
    %c3 = arith.constant 3 : index
    %c0_43 = arith.constant 0 : index
    %c0_44 = arith.constant 0 : index
    %105 = vector.load %arg3[%c3, %c0_43, %c0_44] : memref<4x8x32xbf16, #tpu.memory_space<vmem>>, vector<1x8x32xbf16>
    %106 = vector.shape_cast %105 : vector<1x8x32xbf16> to vector<8x32xbf16>
    %cst_45 = arith.constant dense<0.000000e+00> : vector<8x32xf32>
    %107 = tpu.matmul %104, %106, %cst_45 {dimension_numbers = #tpu.dot_dimension_numbers<[1], [0], [0], [1], [0, 0, 1, 1], [], []>} : vector<8x8xbf16>, vector<8x32xbf16>, vector<8x32xf32> -> vector<8x32xf32>
    %108 = arith.addf %86, %107 : vector<8x32xf32>
    %109 = arith.addf %7, %108 : vector<8x32xf32>
    %cst_46 = arith.constant dense<0.000000e+00> : vector<8xf32>
    %110 = vector.multi_reduction <add>, %109, %cst_46 [1] : vector<8x32xf32> to vector<8xf32>
    %111 = vector.shape_cast %110 : vector<8xf32> to vector<8x1xf32>
    %cst_47 = arith.constant 3.200000e+01 : f32
    %112 = vector.broadcast %cst_47 : f32 to vector<8x1xf32>
    %113 = arith.divf %111, %112 : vector<8x1xf32>
    %114 = vector.broadcast %113 : vector<8x1xf32> to vector<8x32xf32>
    %115 = arith.subf %109, %114 : vector<8x32xf32>
    %116 = arith.mulf %115, %115 : vector<8x32xf32>
    %cst_48 = arith.constant dense<0.000000e+00> : vector<8xf32>
    %117 = vector.multi_reduction <add>, %116, %cst_48 [1] : vector<8x32xf32> to vector<8xf32>
    %118 = vector.shape_cast %117 : vector<8xf32> to vector<8x1xf32>
    %cst_49 = arith.constant 3.200000e+01 : f32
    %119 = vector.broadcast %cst_49 : f32 to vector<8x1xf32>
    %120 = arith.divf %118, %119 : vector<8x1xf32>
    %cst_50 = arith.constant 9.99999974E-6 : f32
    %121 = vector.broadcast %cst_50 : f32 to vector<8x1xf32>
    %122 = arith.addf %120, %121 : vector<8x1xf32>
    %123 = math.rsqrt %122 : vector<8x1xf32>
    %124 = vector.broadcast %123 : vector<8x1xf32> to vector<8x32xf32>
    %125 = arith.mulf %115, %124 : vector<8x32xf32>
    %126 = vector.broadcast %2 : vector<1x32xf32> to vector<8x32xf32>
    %127 = arith.mulf %125, %126 : vector<8x32xf32>
    %128 = vector.broadcast %3 : vector<1x32xf32> to vector<8x32xf32>
    %129 = arith.addf %127, %128 : vector<8x32xf32>
    %130 = arith.truncf %129 : vector<8x32xf32> to vector<8x32xbf16>
    %c0_51 = arith.constant 0 : index
    %c0_52 = arith.constant 0 : index
    %131 = vector.load %arg4[%c0_51, %c0_52] : memref<32x64xbf16, #tpu.memory_space<vmem>>, vector<32x64xbf16>
    %cst_53 = arith.constant dense<0.000000e+00> : vector<8x64xf32>
    %132 = tpu.matmul %130, %131, %cst_53 {dimension_numbers = #tpu.dot_dimension_numbers<[1], [0], [0], [1], [0, 0, 1, 1], [], []>} : vector<8x32xbf16>, vector<32x64xbf16>, vector<8x64xf32> -> vector<8x64xf32>
    %133 = vector.broadcast %0 : vector<1x64xf32> to vector<8x64xf32>
    %134 = arith.addf %132, %133 : vector<8x64xf32>
    %cst_54 = arith.constant 0.000000e+00 : f32
    %135 = vector.broadcast %cst_54 : f32 to vector<8x64xf32>
    %136 = arith.maximumf %134, %135 : vector<8x64xf32>
    %137 = arith.truncf %136 : vector<8x64xf32> to vector<8x64xbf16>
    %c0_55 = arith.constant 0 : index
    %c0_56 = arith.constant 0 : index
    %138 = vector.load %arg6[%c0_55, %c0_56] : memref<64x32xbf16, #tpu.memory_space<vmem>>, vector<64x32xbf16>
    %cst_57 = arith.constant dense<0.000000e+00> : vector<8x32xf32>
    %139 = tpu.matmul %137, %138, %cst_57 {dimension_numbers = #tpu.dot_dimension_numbers<[1], [0], [0], [1], [0, 0, 1, 1], [], []>} : vector<8x64xbf16>, vector<64x32xbf16>, vector<8x32xf32> -> vector<8x32xf32>
    %140 = vector.broadcast %1 : vector<1x32xf32> to vector<8x32xf32>
    %141 = arith.addf %139, %140 : vector<8x32xf32>
    %142 = arith.addf %129, %141 : vector<8x32xf32>
    %cst_58 = arith.constant dense<0.000000e+00> : vector<8xf32>
    %143 = vector.multi_reduction <add>, %142, %cst_58 [1] : vector<8x32xf32> to vector<8xf32>
    %144 = vector.shape_cast %143 : vector<8xf32> to vector<8x1xf32>
    %cst_59 = arith.constant 3.200000e+01 : f32
    %145 = vector.broadcast %cst_59 : f32 to vector<8x1xf32>
    %146 = arith.divf %144, %145 : vector<8x1xf32>
    %147 = vector.broadcast %146 : vector<8x1xf32> to vector<8x32xf32>
    %148 = arith.subf %142, %147 : vector<8x32xf32>
    %149 = arith.mulf %148, %148 : vector<8x32xf32>
    %cst_60 = arith.constant dense<0.000000e+00> : vector<8xf32>
    %150 = vector.multi_reduction <add>, %149, %cst_60 [1] : vector<8x32xf32> to vector<8xf32>
    %151 = vector.shape_cast %150 : vector<8xf32> to vector<8x1xf32>
    %cst_61 = arith.constant 3.200000e+01 : f32
    %152 = vector.broadcast %cst_61 : f32 to vector<8x1xf32>
    %153 = arith.divf %151, %152 : vector<8x1xf32>
    %cst_62 = arith.constant 9.99999974E-6 : f32
    %154 = vector.broadcast %cst_62 : f32 to vector<8x1xf32>
    %155 = arith.addf %153, %154 : vector<8x1xf32>
    %156 = math.rsqrt %155 : vector<8x1xf32>
    %157 = vector.broadcast %156 : vector<8x1xf32> to vector<8x32xf32>
    %158 = arith.mulf %148, %157 : vector<8x32xf32>
    %159 = vector.broadcast %4 : vector<1x32xf32> to vector<8x32xf32>
    %160 = arith.mulf %158, %159 : vector<8x32xf32>
    %161 = vector.broadcast %5 : vector<1x32xf32> to vector<8x32xf32>
    %162 = arith.addf %160, %161 : vector<8x32xf32>
    %163 = vector.shape_cast %162 : vector<8x32xf32> to vector<1x8x32xf32>
    %c0_63 = arith.constant 0 : index
    %c0_64 = arith.constant 0 : index
    %c0_65 = arith.constant 0 : index
    %164 = vector.load %arg12[%c0_63, %c0_64, %c0_65] : memref<1x8x32xf32, #tpu.memory_space<vmem>>, vector<1x8x32xf32>
    tpu.vector_store %arg12[%c0_63, %c0_64, %c0_65], %163 {strides = array<i32>} : memref<1x8x32xf32, #tpu.memory_space<vmem>>, vector<1x8x32xf32>,
    return
  }
  func.func @transform_0(%arg0: i32) -> (i32, i32, i32) {
    %c0_i32 = arith.constant 0 : i32
    %c0_i32_0 = arith.constant 0 : i32
    %c0_i32_1 = arith.constant 0 : i32
    return %arg0, %c0_i32, %c0_i32_0 : i32, i32, i32
  }
  func.func @transform_1(%arg0: i32) -> (i32, i32) {
    %c0_i32 = arith.constant 0 : i32
    %c0_i32_0 = arith.constant 0 : i32
    %c0_i32_1 = arith.constant 0 : i32
    return %c0_i32, %c0_i32_0 : i32, i32
  }
  func.func @transform_2(%arg0: i32) -> (i32, i32, i32) {
    %c0_i32 = arith.constant 0 : i32
    %c0_i32_0 = arith.constant 0 : i32
    %c0_i32_1 = arith.constant 0 : i32
    %c0_i32_2 = arith.constant 0 : i32
    return %c0_i32, %c0_i32_0, %c0_i32_1 : i32, i32, i32
  }
  func.func @transform_3(%arg0: i32) -> (i32, i32) {
    %c0_i32 = arith.constant 0 : i32
    %c0_i32_0 = arith.constant 0 : i32
    %c0_i32_1 = arith.constant 0 : i32
    return %c0_i32, %c0_i32_0 : i32, i32
  }
  func.func @transform_4(%arg0: i32) -> (i32, i32) {
    %c0_i32 = arith.constant 0 : i32
    %c0_i32_0 = arith.constant 0 : i32
    %c0_i32_1 = arith.constant 0 : i32
    return %c0_i32, %c0_i32_0 : i32, i32
  }
  func.func @transform_5(%arg0: i32) -> (i32, i32) {
    %c0_i32 = arith.constant 0 : i32
    %c0_i32_0 = arith.constant 0 : i32
    %c0_i32_1 = arith.constant 0 : i32
    return %c0_i32, %c0_i32_0 : i32, i32
  }
  func.func @transform_6(%arg0: i32) -> (i32, i32) {
    %c0_i32 = arith.constant 0 : i32
    %c0_i32_0 = arith.constant 0 : i32
    %c0_i32_1 = arith.constant 0 : i32
    return %c0_i32, %c0_i32_0 : i32, i32
  }
  func.func @transform_7(%arg0: i32) -> (i32, i32) {
    %c0_i32 = arith.constant 0 : i32
    %c0_i32_0 = arith.constant 0 : i32
    %c0_i32_1 = arith.constant 0 : i32
    return %c0_i32, %c0_i32_0 : i32, i32
  }
  func.func @transform_8(%arg0: i32) -> (i32, i32) {
    %c0_i32 = arith.constant 0 : i32
    %c0_i32_0 = arith.constant 0 : i32
    %c0_i32_1 = arith.constant 0 : i32
    return %c0_i32, %c0_i32_0 : i32, i32
  }
  func.func @transform_9(%arg0: i32) -> (i32, i32) {
    %c0_i32 = arith.constant 0 : i32
    %c0_i32_0 = arith.constant 0 : i32
    %c0_i32_1 = arith.constant 0 : i32
    return %c0_i32, %c0_i32_0 : i32, i32
  }
  func.func @transform_10(%arg0: i32) -> (i32, i32) {
    %c0_i32 = arith.constant 0 : i32
    %c0_i32_0 = arith.constant 0 : i32
    %c0_i32_1 = arith.constant 0 : i32
    return %c0_i32, %c0_i32_0 : i32, i32
  }
  func.func @transform_11(%arg0: i32) -> (i32, i32, i32) {
    %c0_i32 = arith.constant 0 : i32
    %c0_i32_0 = arith.constant 0 : i32
    %c0_i32_1 = arith.constant 0 : i32
    return %arg0, %c0_i32, %c0_i32_0 : i32, i32, i32
  }
}

module attributes {stable_mosaic.version = 11 : i64} {
  func.func @encoder_layer_kernel(%arg0: i32, %arg1: memref<1x8x32xf32, #tpu.memory_space<vmem>>, %arg2: memref<32x96xbf16, #tpu.memory_space<vmem>>, %arg3: memref<4x8x32xbf16, #tpu.memory_space<vmem>>, %arg4: memref<32x64xbf16, #tpu.memory_space<vmem>>, %arg5: memref<1x64xf32, #tpu.memory_space<vmem>>, %arg6: memref<64x32xbf16, #tpu.memory_space<vmem>>, %arg7: memref<1x32xf32, #tpu.memory_space<vmem>>, %arg8: memref<1x32xf32, #tpu.memory_space<vmem>>, %arg9: memref<1x32xf32, #tpu.memory_space<vmem>>, %arg10: memref<1x32xf32, #tpu.memory_space<vmem>>, %arg11: memref<1x32xf32, #tpu.memory_space<vmem>>, %arg12: memref<1x8x32xf32, #tpu.memory_space<vmem>>) attributes {dimension_semantics = [#tpu.dimension_semantics<parallel>], iteration_bounds = array<i64: 2>, scalar_prefetch = 0 : i64, scratch_operands = 0 : i64, tpu.core_type = #tpu.core_type<tc>, window_params = [{transform_indices = @transform_0, window_bounds = array<i64: 1, 8, 32>}, {pipeline_mode = #tpu.pipeline_mode<synchronous>, transform_indices = @transform_1, window_bounds = array<i64: 32, 96>}, {pipeline_mode = #tpu.pipeline_mode<synchronous>, transform_indices = @transform_2, window_bounds = array<i64: 4, 8, 32>}, {pipeline_mode = #tpu.pipeline_mode<synchronous>, transform_indices = @transform_3, window_bounds = array<i64: 32, 64>}, {pipeline_mode = #tpu.pipeline_mode<synchronous>, transform_indices = @transform_4, window_bounds = array<i64: 1, 64>}, {pipeline_mode = #tpu.pipeline_mode<synchronous>, transform_indices = @transform_5, window_bounds = array<i64: 64, 32>}, {pipeline_mode = #tpu.pipeline_mode<synchronous>, transform_indices = @transform_6, window_bounds = array<i64: 1, 32>}, {pipeline_mode = #tpu.pipeline_mode<synchronous>, transform_indices = @transform_7, window_bounds = array<i64: 1, 32>}, {pipeline_mode = #tpu.pipeline_mode<synchronous>, transform_indices = @transform_8, window_bounds = array<i64: 1, 32>}, {pipeline_mode = #tpu.pipeline_mode<synchronous>, transform_indices = @transform_9, window_bounds = array<i64: 1, 32>}, {pipeline_mode = #tpu.pipeline_mode<synchronous>, transform_indices = @transform_10, window_bounds = array<i64: 1, 32>}, {transform_indices = @transform_11, window_bounds = array<i64: 1, 8, 32>}]} {
    %c0 = arith.constant 0 : index
    %c0_0 = arith.constant 0 : index
    %0 = vector.load %arg5[%c0, %c0_0] : memref<1x64xf32, #tpu.memory_space<vmem>>, vector<1x64xf32>
    %c0_1 = arith.constant 0 : index
    %c0_2 = arith.constant 0 : index
    %1 = vector.load %arg7[%c0_1, %c0_2] : memref<1x32xf32, #tpu.memory_space<vmem>>, vector<1x32xf32>
    %c0_3 = arith.constant 0 : index
    %c0_4 = arith.constant 0 : index
    %2 = vector.load %arg8[%c0_3, %c0_4] : memref<1x32xf32, #tpu.memory_space<vmem>>, vector<1x32xf32>
    %c0_5 = arith.constant 0 : index
    %c0_6 = arith.constant 0 : index
    %3 = vector.load %arg9[%c0_5, %c0_6] : memref<1x32xf32, #tpu.memory_space<vmem>>, vector<1x32xf32>
    %c0_7 = arith.constant 0 : index
    %c0_8 = arith.constant 0 : index
    %4 = vector.load %arg10[%c0_7, %c0_8] : memref<1x32xf32, #tpu.memory_space<vmem>>, vector<1x32xf32>
    %c0_9 = arith.constant 0 : index
    %c0_10 = arith.constant 0 : index
    %5 = vector.load %arg11[%c0_9, %c0_10] : memref<1x32xf32, #tpu.memory_space<vmem>>, vector<1x32xf32>
    %c0_11 = arith.constant 0 : index
    %c0_12 = arith.constant 0 : index
    %c0_13 = arith.constant 0 : index
    %6 = vector.load %arg1[%c0_11, %c0_12, %c0_13] : memref<1x8x32xf32, #tpu.memory_space<vmem>>, vector<1x8x32xf32>
    %7 = vector.shape_cast %6 : vector<1x8x32xf32> to vector<8x32xf32>
    %8 = arith.truncf %7 : vector<8x32xf32> to vector<8x32xbf16>
    %c0_14 = arith.constant 0 : index
    %c0_15 = arith.constant 0 : index
    %9 = vector.load %arg2[%c0_14, %c0_15] : memref<32x96xbf16, #tpu.memory_space<vmem>>, vector<32x96xbf16>
    %cst = arith.constant dense<0.000000e+00> : vector<8x96xf32>
    %10 = tpu.matmul %8, %9, %cst {dimension_numbers = #tpu.dot_dimension_numbers<[1], [0], [0], [1], [0, 0, 1, 1], [], []>} : vector<8x32xbf16>, vector<32x96xbf16>, vector<8x96xf32> -> vector<8x96xf32>
    %11 = vector.extract_strided_slice %10 {offsets = [0, 0], sizes = [8, 32], strides = [1, 1]} : vector<8x96xf32> to vector<8x32xf32>
    %12 = arith.truncf %11 : vector<8x32xf32> to vector<8x32xbf16>
    %13 = vector.shape_cast %12 : vector<8x32xbf16> to vector<1x8x32xbf16>
    %14 = vector.extract_strided_slice %10 {offsets = [0, 32], sizes = [8, 32], strides = [1, 1]} : vector<8x96xf32> to vector<8x32xf32>
    %15 = arith.truncf %14 : vector<8x32xf32> to vector<8x32xbf16>
    %16 = vector.shape_cast %15 : vector<8x32xbf16> to vector<1x8x32xbf16>
    %17 = vector.extract_strided_slice %10 {offsets = [0, 64], sizes = [8, 32], strides = [1, 1]} : vector<8x96xf32> to vector<8x32xf32>
    %18 = arith.truncf %17 : vector<8x32xf32> to vector<8x32xbf16>
    %19 = vector.shape_cast %18 : vector<8x32xbf16> to vector<1x8x32xbf16>
    %cst_16 = arith.constant 0.000000e+00 : f32
    %20 = vector.broadcast %cst_16 : f32 to vector<8x32xf32>
    %21 = vector.extract_strided_slice %13 {offsets = [0, 0, 0], sizes = [1, 8, 8], strides = [1, 1, 1]} : vector<1x8x32xbf16> to vector<1x8x8xbf16>
    %22 = vector.extract_strided_slice %16 {offsets = [0, 0, 0], sizes = [1, 8, 8], strides = [1, 1, 1]} : vector<1x8x32xbf16> to vector<1x8x8xbf16>
    %23 = vector.extract_strided_slice %19 {offsets = [0, 0, 0], sizes = [1, 8, 8], strides = [1, 1, 1]} : vector<1x8x32xbf16> to vector<1x8x8xbf16>
    "tpu.trace_start"() <{level = 10 : i32, message = "bqd,bkd->bqk"}> : () -> ()
    %cst_17 = arith.constant dense<0.000000e+00> : vector<1x8x8xf32>
    %24 = tpu.matmul %21, %22, %cst_17 {dimension_numbers = #tpu.dot_dimension_numbers<[2], [2], [1], [1], [0, 0, 0, 1, 1, 1], [0], [0]>} : vector<1x8x8xbf16>, vector<1x8x8xbf16>, vector<1x8x8xf32> -> vector<1x8x8xf32>
    "tpu.trace_stop"() : () -> ()
    %cst_18 = arith.constant dense<0xFF800000> : vector<1x8xf32>
    %25 = vector.multi_reduction <maximumf>, %24, %cst_18 [2] : vector<1x8x8xf32> to vector<1x8xf32>
    %26 = vector.shape_cast %25 : vector<1x8xf32> to vector<1x8x1xf32>
    %27 = vector.broadcast %26 : vector<1x8x1xf32> to vector<1x8x8xf32>
    %28 = arith.subf %24, %27 : vector<1x8x8xf32>
    %29 = math.exp %28 : vector<1x8x8xf32>
    %cst_19 = arith.constant dense<0.000000e+00> : vector<1x8xf32>
    %30 = vector.multi_reduction <add>, %29, %cst_19 [2] : vector<1x8x8xf32> to vector<1x8xf32>
    %31 = vector.shape_cast %30 : vector<1x8xf32> to vector<1x8x1xf32>
    %32 = tpu.reciprocal %31 {approx = true} : vector<1x8x1xf32> -> vector<1x8x1xf32>
    %33 = vector.broadcast %32 : vector<1x8x1xf32> to vector<1x8x8xf32>
    %34 = arith.mulf %29, %33 : vector<1x8x8xf32>
    %35 = arith.truncf %34 : vector<1x8x8xf32> to vector<1x8x8xbf16>
    "tpu.trace_start"() <{level = 10 : i32, message = "bqk,bkd->bqd"}> : () -> ()
    %cst_20 = arith.constant dense<0.000000e+00> : vector<1x8x8xf32>
    %36 = tpu.matmul %35, %23, %cst_20 {dimension_numbers = #tpu.dot_dimension_numbers<[2], [1], [1], [2], [0, 0, 0, 1, 1, 2], [0], [0]>} : vector<1x8x8xbf16>, vector<1x8x8xbf16>, vector<1x8x8xf32> -> vector<1x8x8xf32>
    "tpu.trace_stop"() : () -> ()
    %37 = vector.shape_cast %36 : vector<1x8x8xf32> to vector<8x8xf32>
    %38 = arith.truncf %37 : vector<8x8xf32> to vector<8x8xbf16>
    %c0_21 = arith.constant 0 : index
    %c0_22 = arith.constant 0 : index
    %c0_23 = arith.constant 0 : index
    %39 = vector.load %arg3[%c0_21, %c0_22, %c0_23] : memref<4x8x32xbf16, #tpu.memory_space<vmem>>, vector<1x8x32xbf16>
    %40 = vector.shape_cast %39 : vector<1x8x32xbf16> to vector<8x32xbf16>
    %cst_24 = arith.constant dense<0.000000e+00> : vector<8x32xf32>
    %41 = tpu.matmul %38, %40, %cst_24 {dimension_numbers = #tpu.dot_dimension_numbers<[1], [0], [0], [1], [0, 0, 1, 1], [], []>} : vector<8x8xbf16>, vector<8x32xbf16>, vector<8x32xf32> -> vector<8x32xf32>
    %42 = arith.addf %20, %41 : vector<8x32xf32>
    %43 = vector.extract_strided_slice %13 {offsets = [0, 0, 8], sizes = [1, 8, 8], strides = [1, 1, 1]} : vector<1x8x32xbf16> to vector<1x8x8xbf16>
    %44 = vector.extract_strided_slice %16 {offsets = [0, 0, 8], sizes = [1, 8, 8], strides = [1, 1, 1]} : vector<1x8x32xbf16> to vector<1x8x8xbf16>
    %45 = vector.extract_strided_slice %19 {offsets = [0, 0, 8], sizes = [1, 8, 8], strides = [1, 1, 1]} : vector<1x8x32xbf16> to vector<1x8x8xbf16>
    "tpu.trace_start"() <{level = 10 : i32, message = "bqd,bkd->bqk"}> : () -> ()
    %cst_25 = arith.constant dense<0.000000e+00> : vector<1x8x8xf32>
    %46 = tpu.matmul %43, %44, %cst_25 {dimension_numbers = #tpu.dot_dimension_numbers<[2], [2], [1], [1], [0, 0, 0, 1, 1, 1], [0], [0]>} : vector<1x8x8xbf16>, vector<1x8x8xbf16>, vector<1x8x8xf32> -> vector<1x8x8xf32>
    "tpu.trace_stop"() : () -> ()
    %cst_26 = arith.constant dense<0xFF800000> : vector<1x8xf32>
    %47 = vector.multi_reduction <maximumf>, %46, %cst_26 [2] : vector<1x8x8xf32> to vector<1x8xf32>
    %48 = vector.shape_cast %47 : vector<1x8xf32> to vector<1x8x1xf32>
    %49 = vector.broadcast %48 : vector<1x8x1xf32> to vector<1x8x8xf32>
    %50 = arith.subf %46, %49 : vector<1x8x8xf32>
    %51 = math.exp %50 : vector<1x8x8xf32>
    %cst_27 = arith.constant dense<0.000000e+00> : vector<1x8xf32>
    %52 = vector.multi_reduction <add>, %51, %cst_27 [2] : vector<1x8x8xf32> to vector<1x8xf32>
    %53 = vector.shape_cast %52 : vector<1x8xf32> to vector<1x8x1xf32>
    %54 = tpu.reciprocal %53 {approx = true} : vector<1x8x1xf32> -> vector<1x8x1xf32>
    %55 = vector.broadcast %54 : vector<1x8x1xf32> to vector<1x8x8xf32>
    %56 = arith.mulf %51, %55 : vector<1x8x8xf32>
    %57 = arith.truncf %56 : vector<1x8x8xf32> to vector<1x8x8xbf16>
    "tpu.trace_start"() <{level = 10 : i32, message = "bqk,bkd->bqd"}> : () -> ()
    %cst_28 = arith.constant dense<0.000000e+00> : vector<1x8x8xf32>
    %58 = tpu.matmul %57, %45, %cst_28 {dimension_numbers = #tpu.dot_dimension_numbers<[2], [1], [1], [2], [0, 0, 0, 1, 1, 2], [0], [0]>} : vector<1x8x8xbf16>, vector<1x8x8xbf16>, vector<1x8x8xf32> -> vector<1x8x8xf32>
    "tpu.trace_stop"() : () -> ()
    %59 = vector.shape_cast %58 : vector<1x8x8xf32> to vector<8x8xf32>
    %60 = arith.truncf %59 : vector<8x8xf32> to vector<8x8xbf16>
    %c1 = arith.constant 1 : index
    %c0_29 = arith.constant 0 : index
    %c0_30 = arith.constant 0 : index
    %61 = vector.load %arg3[%c1, %c0_29, %c0_30] : memref<4x8x32xbf16, #tpu.memory_space<vmem>>, vector<1x8x32xbf16>
    %62 = vector.shape_cast %61 : vector<1x8x32xbf16> to vector<8x32xbf16>
    %cst_31 = arith.constant dense<0.000000e+00> : vector<8x32xf32>
    %63 = tpu.matmul %60, %62, %cst_31 {dimension_numbers = #tpu.dot_dimension_numbers<[1], [0], [0], [1], [0, 0, 1, 1], [], []>} : vector<8x8xbf16>, vector<8x32xbf16>, vector<8x32xf32> -> vector<8x32xf32>
    %64 = arith.addf %42, %63 : vector<8x32xf32>
    %65 = vector.extract_strided_slice %13 {offsets = [0, 0, 16], sizes = [1, 8, 8], strides = [1, 1, 1]} : vector<1x8x32xbf16> to vector<1x8x8xbf16>
    %66 = vector.extract_strided_slice %16 {offsets = [0, 0, 16], sizes = [1, 8, 8], strides = [1, 1, 1]} : vector<1x8x32xbf16> to vector<1x8x8xbf16>
    %67 = vector.extract_strided_slice %19 {offsets = [0, 0, 16], sizes = [1, 8, 8], strides = [1, 1, 1]} : vector<1x8x32xbf16> to vector<1x8x8xbf16>
    "tpu.trace_start"() <{level = 10 : i32, message = "bqd,bkd->bqk"}> : () -> ()
    %cst_32 = arith.constant dense<0.000000e+00> : vector<1x8x8xf32>
    %68 = tpu.matmul %65, %66, %cst_32 {dimension_numbers = #tpu.dot_dimension_numbers<[2], [2], [1], [1], [0, 0, 0, 1, 1, 1], [0], [0]>} : vector<1x8x8xbf16>, vector<1x8x8xbf16>, vector<1x8x8xf32> -> vector<1x8x8xf32>
    "tpu.trace_stop"() : () -> ()
    %cst_33 = arith.constant dense<0xFF800000> : vector<1x8xf32>
    %69 = vector.multi_reduction <maximumf>, %68, %cst_33 [2] : vector<1x8x8xf32> to vector<1x8xf32>
    %70 = vector.shape_cast %69 : vector<1x8xf32> to vector<1x8x1xf32>
    %71 = vector.broadcast %70 : vector<1x8x1xf32> to vector<1x8x8xf32>
    %72 = arith.subf %68, %71 : vector<1x8x8xf32>
    %73 = math.exp %72 : vector<1x8x8xf32>
    %cst_34 = arith.constant dense<0.000000e+00> : vector<1x8xf32>
    %74 = vector.multi_reduction <add>, %73, %cst_34 [2] : vector<1x8x8xf32> to vector<1x8xf32>
    %75 = vector.shape_cast %74 : vector<1x8xf32> to vector<1x8x1xf32>
    %76 = tpu.reciprocal %75 {approx = true} : vector<1x8x1xf32> -> vector<1x8x1xf32>
    %77 = vector.broadcast %76 : vector<1x8x1xf32> to vector<1x8x8xf32>
    %78 = arith.mulf %73, %77 : vector<1x8x8xf32>
    %79 = arith.truncf %78 : vector<1x8x8xf32> to vector<1x8x8xbf16>
    "tpu.trace_start"() <{level = 10 : i32, message = "bqk,bkd->bqd"}> : () -> ()
    %cst_35 = arith.constant dense<0.000000e+00> : vector<1x8x8xf32>
    %80 = tpu.matmul %79, %67, %cst_35 {dimension_numbers = #tpu.dot_dimension_numbers<[2], [1], [1], [2], [0, 0, 0, 1, 1, 2], [0], [0]>} : vector<1x8x8xbf16>, vector<1x8x8xbf16>, vector<1x8x8xf32> -> vector<1x8x8xf32>
    "tpu.trace_stop"() : () -> ()
    %81 = vector.shape_cast %80 : vector<1x8x8xf32> to vector<8x8xf32>
    %82 = arith.truncf %81 : vector<8x8xf32> to vector<8x8xbf16>
    %c2 = arith.constant 2 : index
    %c0_36 = arith.constant 0 : index
    %c0_37 = arith.constant 0 : index
    %83 = vector.load %arg3[%c2, %c0_36, %c0_37] : memref<4x8x32xbf16, #tpu.memory_space<vmem>>, vector<1x8x32xbf16>
    %84 = vector.shape_cast %83 : vector<1x8x32xbf16> to vector<8x32xbf16>
    %cst_38 = arith.constant dense<0.000000e+00> : vector<8x32xf32>
    %85 = tpu.matmul %82, %84, %cst_38 {dimension_numbers = #tpu.dot_dimension_numbers<[1], [0], [0], [1], [0, 0, 1, 1], [], []>} : vector<8x8xbf16>, vector<8x32xbf16>, vector<8x32xf32> -> vector<8x32xf32>
    %86 = arith.addf %64, %85 : vector<8x32xf32>
    %87 = vector.extract_strided_slice %13 {offsets = [0, 0, 24], sizes = [1, 8, 8], strides = [1, 1, 1]} : vector<1x8x32xbf16> to vector<1x8x8xbf16>
    %88 = vector.extract_strided_slice %16 {offsets = [0, 0, 24], sizes = [1, 8, 8], strides = [1, 1, 1]} : vector<1x8x32xbf16> to vector<1x8x8xbf16>
    %89 = vector.extract_strided_slice %19 {offsets = [0, 0, 24], sizes = [1, 8, 8], strides = [1, 1, 1]} : vector<1x8x32xbf16> to vector<1x8x8xbf16>
    "tpu.trace_start"() <{level = 10 : i32, message = "bqd,bkd->bqk"}> : () -> ()
    %cst_39 = arith.constant dense<0.000000e+00> : vector<1x8x8xf32>
    %90 = tpu.matmul %87, %88, %cst_39 {dimension_numbers = #tpu.dot_dimension_numbers<[2], [2], [1], [1], [0, 0, 0, 1, 1, 1], [0], [0]>} : vector<1x8x8xbf16>, vector<1x8x8xbf16>, vector<1x8x8xf32> -> vector<1x8x8xf32>
    "tpu.trace_stop"() : () -> ()
    %cst_40 = arith.constant dense<0xFF800000> : vector<1x8xf32>
    %91 = vector.multi_reduction <maximumf>, %90, %cst_40 [2] : vector<1x8x8xf32> to vector<1x8xf32>
    %92 = vector.shape_cast %91 : vector<1x8xf32> to vector<1x8x1xf32>
    %93 = vector.broadcast %92 : vector<1x8x1xf32> to vector<1x8x8xf32>
    %94 = arith.subf %90, %93 : vector<1x8x8xf32>
    %95 = math.exp %94 : vector<1x8x8xf32>
    %cst_41 = arith.constant dense<0.000000e+00> : vector<1x8xf32>
    %96 = vector.multi_reduction <add>, %95, %cst_41 [2] : vector<1x8x8xf32> to vector<1x8xf32>
    %97 = vector.shape_cast %96 : vector<1x8xf32> to vector<1x8x1xf32>
    %98 = tpu.reciprocal %97 {approx = true} : vector<1x8x1xf32> -> vector<1x8x1xf32>
    %99 = vector.broadcast %98 : vector<1x8x1xf32> to vector<1x8x8xf32>
    %100 = arith.mulf %95, %99 : vector<1x8x8xf32>
    %101 = arith.truncf %100 : vector<1x8x8xf32> to vector<1x8x8xbf16>
    "tpu.trace_start"() <{level = 10 : i32, message = "bqk,bkd->bqd"}> : () -> ()
    %cst_42 = arith.constant dense<0.000000e+00> : vector<1x8x8xf32>
    %102 = tpu.matmul %101, %89, %cst_42 {dimension_numbers = #tpu.dot_dimension_numbers<[2], [1], [1], [2], [0, 0, 0, 1, 1, 2], [0], [0]>} : vector<1x8x8xbf16>, vector<1x8x8xbf16>, vector<1x8x8xf32> -> vector<1x8x8xf32>
    "tpu.trace_stop"() : () -> ()
    %103 = vector.shape_cast %102 : vector<1x8x8xf32> to vector<8x8xf32>
    %104 = arith.truncf %103 : vector<8x8xf32> to vector<8x8xbf16>
    %c3 = arith.constant 3 : index
    %c0_43 = arith.constant 0 : index
    %c0_44 = arith.constant 0 : index
    %105 = vector.load %arg3[%c3, %c0_43, %c0_44] : memref<4x8x32xbf16, #tpu.memory_space<vmem>>, vector<1x8x32xbf16>
    %106 = vector.shape_cast %105 : vector<1x8x32xbf16> to vector<8x32xbf16>
    %cst_45 = arith.constant dense<0.000000e+00> : vector<8x32xf32>
    %107 = tpu.matmul %104, %106, %cst_45 {dimension_numbers = #tpu.dot_dimension_numbers<[1], [0], [0], [1], [0, 0, 1, 1], [], []>} : vector<8x8xbf16>, vector<8x32xbf16>, vector<8x32xf32> -> vector<8x32xf32>
    %108 = arith.addf %86, %107 : vector<8x32xf32>
    %109 = arith.addf %7, %108 : vector<8x32xf32>
    %cst_46 = arith.constant dense<0.000000e+00> : vector<8xf32>
    %110 = vector.multi_reduction <add>, %109, %cst_46 [1] : vector<8x32xf32> to vector<8xf32>
    %111 = vector.shape_cast %110 : vector<8xf32> to vector<8x1xf32>
    %cst_47 = arith.constant 3.200000e+01 : f32
    %112 = vector.broadcast %cst_47 : f32 to vector<8x1xf32>
    %113 = arith.divf %111, %112 : vector<8x1xf32>
    %114 = vector.broadcast %113 : vector<8x1xf32> to vector<8x32xf32>
    %115 = arith.subf %109, %114 : vector<8x32xf32>
    %116 = arith.mulf %115, %115 : vector<8x32xf32>
    %cst_48 = arith.constant dense<0.000000e+00> : vector<8xf32>
    %117 = vector.multi_reduction <add>, %116, %cst_48 [1] : vector<8x32xf32> to vector<8xf32>
    %118 = vector.shape_cast %117 : vector<8xf32> to vector<8x1xf32>
    %cst_49 = arith.constant 3.200000e+01 : f32
    %119 = vector.broadcast %cst_49 : f32 to vector<8x1xf32>
    %120 = arith.divf %118, %119 : vector<8x1xf32>
    %cst_50 = arith.constant 9.99999974E-6 : f32
    %121 = vector.broadcast %cst_50 : f32 to vector<8x1xf32>
    %122 = arith.addf %120, %121 : vector<8x1xf32>
    %123 = math.rsqrt %122 : vector<8x1xf32>
    %124 = vector.broadcast %123 : vector<8x1xf32> to vector<8x32xf32>
    %125 = arith.mulf %115, %124 : vector<8x32xf32>
    %126 = vector.broadcast %2 : vector<1x32xf32> to vector<8x32xf32>
    %127 = arith.mulf %125, %126 : vector<8x32xf32>
    %128 = vector.broadcast %3 : vector<1x32xf32> to vector<8x32xf32>
    %129 = arith.addf %127, %128 : vector<8x32xf32>
    %130 = arith.truncf %129 : vector<8x32xf32> to vector<8x32xbf16>
    %c0_51 = arith.constant 0 : index
    %c0_52 = arith.constant 0 : index
    %131 = vector.load %arg4[%c0_51, %c0_52] : memref<32x64xbf16, #tpu.memory_space<vmem>>, vector<32x64xbf16>
    %cst_53 = arith.constant dense<0.000000e+00> : vector<8x64xf32>
    %132 = tpu.matmul %130, %131, %cst_53 {dimension_numbers = #tpu.dot_dimension_numbers<[1], [0], [0], [1], [0, 0, 1, 1], [], []>} : vector<8x32xbf16>, vector<32x64xbf16>, vector<8x64xf32> -> vector<8x64xf32>
    %133 = vector.broadcast %0 : vector<1x64xf32> to vector<8x64xf32>
    %134 = arith.addf %132, %133 : vector<8x64xf32>
    %cst_54 = arith.constant 0.000000e+00 : f32
    %135 = vector.broadcast %cst_54 : f32 to vector<8x64xf32>
    %136 = arith.maximumf %134, %135 : vector<8x64xf32>
    %137 = arith.truncf %136 : vector<8x64xf32> to vector<8x64xbf16>
    %c0_55 = arith.constant 0 : index
    %c0_56 = arith.constant 0 : index
    %138 = vector.load %arg6[%c0_55, %c0_56] : memref<64x32xbf16, #tpu.memory_space<vmem>>, vector<64x32xbf16>
    %cst_57 = arith.constant dense<0.000000e+00> : vector<8x32xf32>
    %139 = tpu.matmul %137, %138, %cst_57 {dimension_numbers = #tpu.dot_dimension_numbers<[1], [0], [0], [1], [0, 0, 1, 1], [], []>} : vector<8x64xbf16>, vector<64x32xbf16>, vector<8x32xf32> -> vector<8x32xf32>
    %140 = vector.broadcast %1 : vector<1x32xf32> to vector<8x32xf32>
    %141 = arith.addf %139, %140 : vector<8x32xf32>
    %142 = arith.addf %129, %141 : vector<8x32xf32>
    %cst_58 = arith.constant dense<0.000000e+00> : vector<8xf32>
    %143 = vector.multi_reduction <add>, %142, %cst_58 [1] : vector<8x32xf32> to vector<8xf32>
    %144 = vector.shape_cast %143 : vector<8xf32> to vector<8x1xf32>
    %cst_59 = arith.constant 3.200000e+01 : f32
    %145 = vector.broadcast %cst_59 : f32 to vector<8x1xf32>
    %146 = arith.divf %144, %145 : vector<8x1xf32>
    %147 = vector.broadcast %146 : vector<8x1xf32> to vector<8x32xf32>
    %148 = arith.subf %142, %147 : vector<8x32xf32>
    %149 = arith.mulf %148, %148 : vector<8x32xf32>
    %cst_60 = arith.constant dense<0.000000e+00> : vector<8xf32>
    %150 = vector.multi_reduction <add>, %149, %cst_60 [1] : vector<8x32xf32> to vector<8xf32>
    %151 = vector.shape_cast %150 : vector<8xf32> to vector<8x1xf32>
    %cst_61 = arith.constant 3.200000e+01 : f32
    %152 = vector.broadcast %cst_61 : f32 to vector<8x1xf32>
    %153 = arith.divf %151, %152 : vector<8x1xf32>
    %cst_62 = arith.constant 9.99999974E-6 : f32
    %154 = vector.broadcast %cst_62 : f32 to vector<8x1xf32>
    %155 = arith.addf %153, %154 : vector<8x1xf32>
    %156 = math.rsqrt %155 : vector<8x1xf32>
    %157 = vector.broadcast %156 : vector<8x1xf32> to vector<8x32xf32>
    %158 = arith.mulf %148, %157 : vector<8x32xf32>
    %159 = vector.broadcast %4 : vector<1x32xf32> to vector<8x32xf32>
    %160 = arith.mulf %158, %159 : vector<8x32xf32>
    %161 = vector.broadcast %5 : vector<1x32xf32> to vector<8x32xf32>
    %162 = arith.addf %160, %161 : vector<8x32xf32>
    %163 = vector.shape_cast %162 : vector<8x32xf32> to vector<1x8x32xf32>
    %c0_63 = arith.constant 0 : index
    %c0_64 = arith.constant 0 : index
    %c0_65 = arith.constant 0 : index
    %164 = vector.load %arg12[%c0_63, %c0_64, %c0_65] : memref<1x8x32xf32, #tpu.memory_space<vmem>>, vector<1x8x32xf32>
    tpu.vector_store %arg12[%c0_63, %c0_64, %c0_65], %163 {strides = array<i32>} : memref<1x8x32xf32, #tpu.memory_space<vmem>>, vector<1x8x32xf32>,
    return
  }
  func.func @transform_0(%arg0: i32) -> (i32, i32, i32) {
    %c0_i32 = arith.constant 0 : i32
    %c0_i32_0 = arith.constant 0 : i32
    %c0_i32_1 = arith.constant 0 : i32
    return %arg0, %c0_i32, %c0_i32_0 : i32, i32, i32
  }
  func.func @transform_1(%arg0: i32) -> (i32, i32) {
    %c0_i32 = arith.constant 0 : i32
    %c0_i32_0 = arith.constant 0 : i32
    %c0_i32_1 = arith.constant 0 : i32
    return %c0_i32, %c0_i32_0 : i32, i32
  }
  func.func @transform_2(%arg0: i32) -> (i32, i32, i32) {
    %c0_i32 = arith.constant 0 : i32
    %c0_i32_0 = arith.constant 0 : i32
    %c0_i32_1 = arith.constant 0 : i32
    %c0_i32_2 = arith.constant 0 : i32
    return %c0_i32, %c0_i32_0, %c0_i32_1 : i32, i32, i32
  }
  func.func @transform_3(%arg0: i32) -> (i32, i32) {
    %c0_i32 = arith.constant 0 : i32
    %c0_i32_0 = arith.constant 0 : i32
    %c0_i32_1 = arith.constant 0 : i32
    return %c0_i32, %c0_i32_0 : i32, i32
  }
  func.func @transform_4(%arg0: i32) -> (i32, i32) {
    %c0_i32 = arith.constant 0 : i32
    %c0_i32_0 = arith.constant 0 : i32
    %c0_i32_1 = arith.constant 0 : i32
    return %c0_i32, %c0_i32_0 : i32, i32
  }
  func.func @transform_5(%arg0: i32) -> (i32, i32) {
    %c0_i32 = arith.constant 0 : i32
    %c0_i32_0 = arith.constant 0 : i32
    %c0_i32_1 = arith.constant 0 : i32
    return %c0_i32, %c0_i32_0 : i32, i32
  }
  func.func @transform_6(%arg0: i32) -> (i32, i32) {
    %c0_i32 = arith.constant 0 : i32
    %c0_i32_0 = arith.constant 0 : i32
    %c0_i32_1 = arith.constant 0 : i32
    return %c0_i32, %c0_i32_0 : i32, i32
  }
  func.func @transform_7(%arg0: i32) -> (i32, i32) {
    %c0_i32 = arith.constant 0 : i32
    %c0_i32_0 = arith.constant 0 : i32
    %c0_i32_1 = arith.constant 0 : i32
    return %c0_i32, %c0_i32_0 : i32, i32
  }
  func.func @transform_8(%arg0: i32) -> (i32, i32) {
    %c0_i32 = arith.constant 0 : i32
    %c0_i32_0 = arith.constant 0 : i32
    %c0_i32_1 = arith.constant 0 : i32
    return %c0_i32, %c0_i32_0 : i32, i32
  }
  func.func @transform_9(%arg0: i32) -> (i32, i32) {
    %c0_i32 = arith.constant 0 : i32
    %c0_i32_0 = arith.constant 0 : i32
    %c0_i32_1 = arith.constant 0 : i32
    return %c0_i32, %c0_i32_0 : i32, i32
  }
  func.func @transform_10(%arg0: i32) -> (i32, i32) {
    %c0_i32 = arith.constant 0 : i32
    %c0_i32_0 = arith.constant 0 : i32
    %c0_i32_1 = arith.constant 0 : i32
    return %c0_i32, %c0_i32_0 : i32, i32
  }
  func.func @transform_11(%arg0: i32) -> (i32, i32, i32) {
    %c0_i32 = arith.constant 0 : i32
    %c0_i32_0 = arith.constant 0 : i32
    %c0_i32_1 = arith.constant 0 : i32
    return %arg0, %c0_i32, %c0_i32_0 : i32, i32, i32
  }
}

</mosaic_0001>

<bundles_post_ra>
// kernel: tpu_custom_call.1
= control target key start
LH: loop header
LB: loop body
LE: loop exit
PB: predicated region body
PF: predicated region fallthrough
CT: control target
= control target key end

     0   :  { %s2137_s0 = inlined_call_operand.vmem [shape: f32[2,8,32], index: 0, kind: input, shape index: {}]   ;;  %s2138_s1 = inlined_call_operand.vmem [shape: bf16[32,96], index: 1, kind: input, shape index: {}]   ;;  %s2139_s2 = inlined_call_operand.vmem [shape: bf16[4,8,32], index: 2, kind: input, shape index: {}]   ;;  %s2140_s3 = inlined_call_operand.hbm [shape: bf16[32,64], index: 3, kind: input, shape index: {}]   ;;  %s2141_s4 = inlined_call_operand.vmem [shape: f32[1,64], index: 4, kind: input, shape index: {}]   ;;  %s2142_s5 = inlined_call_operand.vmem [shape: bf16[64,32], index: 5, kind: input, shape index: {}]   ;;  %s2143_s6 = inlined_call_operand.vmem [shape: f32[1,32], index: 6, kind: input, shape index: {}]   ;;  %s2144_s7 = inlined_call_operand.vmem [shape: f32[1,32], index: 7, kind: input, shape index: {}]   ;;  %s2145_s8 = inlined_call_operand.vmem [shape: f32[1,32], index: 8, kind: input, shape index: {}]   ;;  %s2146_s9 = inlined_call_operand.vmem [shape: f32[1,32], index: 9, kind: input, shape index: {}]   ;;  %s2147_s10 = inlined_call_operand.vmem [shape: f32[1,32], index: 10, kind: input, shape index: {}]   ;;  %s2148_s11 = inlined_call_operand.hbm [shape: f32[2,8,32], index: 11, kind: output, shape index: {}]  }
   0x1   :  { %2152 = sst [smem:[#allocation9_spill]] %s2137_s0 }
   0x2   :  { %16 = vsyncpa [#allocation3], 0 }
   0x3   :  { %17 = vsyncpa [#allocation4], 0 }
   0x4   :  { %19 = vsyncpa [#allocation4 + $0x1], 0  ;;  %s1843_s17 = smov 0   ;;  %s1845_s18 = smov 0  }
   0x5   :  { %s1847_s19 = smov 0   ;;  %s1849_s20 = smov 0  }
   0x6 LB: > { %s1864_s21 = sadd.s32 4294967295, %s1764_s20   ;;  %s1398_s22 = sadd.s32 4294967294, %s1764_s20   ;;  %s1764_s20 = sphi %s1849_s20, %s2168_s20   ;;  %s1760_s19 = sphi %s1847_s19, %s2167_s19   ;;  %s1756_s18 = sphi %s1845_s18, %s2166_s18   ;;  %s1752_s17 = sphi %s1843_s17, %s2165_s17  }
   0x7   : > { %s1868_s23 = sadd.s32 1, %s1764_s20   ;;  %s268_s24 = sadd.s32 1, %s1760_s19 }
   0x8   : > { %s265_s25 = ssub.s32 %s1764_s20, %s1868_s23  ;;  %p278_p0 = scmp.ne.s32.totalorder %s1760_s19, %s1756_s18 }
   0x9   : > { %p266_p1 = scmp.eq.s32.totalorder %s265_s25, 0  ;;  %p279_p2 = scmp.eq.s32.totalorder %s1864_s21, 1 }
   0xa   : > { %p284_p3 = scmp.ne.s32.totalorder %s1756_s18, %s1752_s17  ;;  %p285_p4 = scmp.eq.s32.totalorder %s1398_s22, 1 }
   0xb   : > { %s1879_s26 = scalar_select %p266_p1, %s1760_s19, %s268_s24  }
   0xc   : > { %p1881_p5 = por %p279_p2, %p278_p0  ;;  %p1885_p6 = por %p285_p4, %p284_p3 }
   0xd   : > { %2153 = sst [smem:[#allocation8_spill]] %s1879_s26  ;;  %p1399_p7 = scmp.ge.s32.totalorder %s1764_s20, 1 }
   0xe   : > { %s2154_s27 = scalar_select %p1881_p5, 1, 0 }
   0xf   : > { %s2155_s28 = scalar_select %p1885_p6, 1, 0 }
  0x10   : > { %p292_p8 = scmp.lt.s32.totalorder %s1764_s20, 3  ;;  %p2149_p9 = scmp.eq.s32.totalorder %s1864_s21, 0 }
  0x11   : > { %s1766_s30 = smov [#allocation2]   ;;  %s1670_s16 = scalar_lea.hbm %s2140_s3, 256 }
  0x12   : > { %p1892_p10 = pnand %p1399_p7, %p292_p8  ;;  %s310_s12 = sshll.u32 %s1766_s30, 4  ;;  %s311_s12 = int_to_ptr.vmem [resolvable:$true] %s310_s12 }
  0x13   : > { %p1671_p13 = scmp.ne.s32.totalorder %s2140_s3, %s1670_s16  ;;  %p1677_p3 = scmp.lt.u32.totalorder %s1670_s16, %s2140_s3 }
  0x14   : > { %s2156_s29 = scalar_select %p1892_p10, 1, 0 }
  0x15   : > { %p1583_p11 = pneg %p1892_p10 }
  0x17   : > { %p1900_p12 = pnand %p2149_p9, %p1583_p11 }
  0x19   : > { %p1672_p0 = pneg %p1900_p12 }
  0x1b   : > { %p1673_p1 = pnand %p1672_p0, %p1671_p13 }
  0x1d   : > { %p1674_p2 = pneg %p1673_p1 }
  0x1f   : > { %p1679_p4 = pnand %p1677_p3, %p1674_p2 }
  0x21   : > { %1682 = shalt.err (!%p1679_p4)
}
  0x22   : > { %s1683_s26 = scalar_lea.vmem %s311_s12, 256  ;;  %p1691_p9 = scmp.lt.s32.totalorder %s311_s12, %s311_s12 }
  0x23   : > { %p1684_p7 = scmp.ne.s32.totalorder %s311_s12, %s1683_s26  ;;  %p1692_p6 = scmp.lt.s32.totalorder %s1683_s26, %s1683_s26 }
  0x25   : > { %p1686_p8 = pnand %p1684_p7, %p1672_p0  ;;  %p1693_p5 = por %p1692_p6, %p1691_p9 }
  0x27   : > { %p1687_p11 = pneg %p1686_p8 }
  0x29   : > { %p1694_p10 = pnand %p1693_p5, %p1687_p11 }
  0x2b   : > { %1697 = shalt.err (!%p1694_p10)
}
  0x2c   : > { %s1767_s14 = smov 64   ;;  %s1768_s15 = smov 4  }
  0x2d   : > { %1586 = dma.hbm_to_vmem [thread:$0]  (!%p1900_p12), %s2140_s3, 256, %s311_s12, [#allocation3], %s1767_s14, %s1767_s14, %s1768_s15  }
  0x2e   : > { %p2158_p13 = scmp.ne.s32.totalorder %s2156_s29, 0 }
  0x2f   : > { %p2159_p1 = scmp.eq.s32.totalorder (!%p2158_p13), %s1864_s21, 0 }
  0x30   : > { %354 = sbr.rel (%p2158_p13) target bundleno = 3731 (0xe93), region = 64 }
  0x37   : > { %1743 = dma.done.wait (%p2159_p1), [#allocation3], 256   ;;  %p2160_p0 = pmov %p2159_p1 }
  0x38   : > { %p393_p5 = scmp.lt.s32.totalorder %s1864_s21, 1  ;;  %v1769_v0 = vmov 0.0   ;;  %vm1770_vm0 = vmmov 0   ;;  %s2161_s0 = sld [smem:[#allocation9_spill]]  ;;  %v1642_v1 = vld [vmem:[%s2138_s1] sm:$0xff]   ;;  %v1643_v2 = vld [vmem:[%s2138_s1 + $0x8] sm:$0xff]  }
  0x39   : > { %1745 = vsyncadd (%p2160_p0), [#allocation3], 4294967040  ;;  %1477 = vmatprep.subr.bf16.mxu1 %v1769_v0  ;;  %1481 = vmatprep.mubr.msk.bf16.mxu1 %vm1770_vm0, %v1769_v0  ;;  %vm422_vm1 = vcmask 261120   ;;  %s1771_s22 = smov 120   ;;  %s1772_s24 = smov 96   ;;  %vm470_vm2 = vcmask 64512  }
  0x3a   : > { %s394_s26 = scalar_select %p393_p5, %s1864_s21, 1  ;;  %1491 = vmatprep.subr.bf16.mxu0 %v1769_v0  ;;  %1493 = vmatprep.mubr.msk.bf16.mxu0 %vm1770_vm0, %v1769_v0  ;;  %vm534_vm3 = vcmask 1043456   ;;  %v579_v47 = vld [vmem:[%s2139_s2] sm:$0xf]  ;;  %v1413_v49 = vld [vmem:[%s2139_s2 + $0x4] sm:$0xf] }
  0x3b   : > { %1478 = vmatpush3.bf16.msra.mxu1 %v1642_v1  ;;  %s1775_s12 = smov 56   ;;  %s1776_s13 = smov 112   ;;  %v743_v48 = vsel %vm534_vm3, %v579_v47, 0  ;;  %v697_v50 = vsel %vm534_vm3, %v1413_v49, 0  ;;  %vm1240_vm4 = vcmask 523264  }
  0x3c   : > { %s1405_s29 = sshll.u32 %s394_s26, 3  ;;  %1479 = vmatprep.subr.bf16.mxu1 %v1769_v0  ;;  %s1773_s26 = smov 88  }
  0x3d   : > { %s1439_s30 = sshll.u32 %s1864_s21, 7  ;;  %p2162_p9 = scmp.ne.s32.totalorder %s2154_s27, 0 }
  0x3e   : > { %s396_s16 = scalar_lea.vmem %s2161_s0, %s1405_s29  ;;  %s1774_s29 = smov 64  }
  0x3f   : > { %v1943_v3 = vld [vmem:[%s396_s16] sm:$0xff]  ;;  %1480 = vmatpush3.bf16.msra.mxu1 %v1643_v2  ;;  %s1777_s16 = smov 80   ;;  %s2094_s0 = scalar_lea.hbm %s2148_s11, %s1439_s30 }
  0x40   : > { %v405_v4 = vpack.c.bf16 %v1943_v3, %v1943_v3  ;;  %1485 = vmatprep.subr.bf16.mxu1 %v1769_v0  ;;  %s1782_s21 = smov [#allocation5]  }
  0x42   : > { %1482 = vmatmul.mubr.msk.bf16.vlgmr.msra.gmra.mrb[0].mxu1 %vm422_vm1, %v405_v4 }
  0x43   : > { %1487 = vmatprep.mubr.msk.bf16.mxu1 %vm1770_vm0, %v1769_v0 }
 0x115   : > { %v460_v5 = vpop.f32.mrb[0].mxu1 }
 0x116   : > { %v1952_v6 = vpack.c.bf16 %v460_v5, %v460_v5  ;;  %v1483_v7 = vpop.f32.mrb[1].mxu1 }
 0x117   : > { %v463_v8 = vpop.f32.mrb[2].mxu1 }
 0x118   : > { %580 = vrot.lane.b32.xlu1 %v1952_v6, %s1771_s22  ;;  %468 = vrot.lane.b32.xlu0 %v1952_v6, %s1772_s24  ;;  %v1484_v9 = vpop.f32.mrb[3].mxu1  ;;  %s1778_s22 = smov 72   ;;  %s1779_s24 = smov 104  }
 0x11c   : > { %582 = vrot.lane.b32.xlu0 %v1952_v6, %s1773_s26  ;;  %s1780_s26 = smov 48  }
 0x18a   : > { %v469_v10 = vpop.permute.xlu0 %468  ;;  %v581_v14 = vpop.permute.xlu1 %580 }
 0x18b   : > { %v475_v11 = vsel %vm470_vm2, %v469_v10, 0 }
 0x18c   : > { %1486 = vmatpush3.bf16.xpose.msra.mxu1 %v475_v11 }
 0x18d   : > { %1497 = vmatprep.subr.bf16.mxu1 %v1769_v0 }
 0x18e   : > { %v583_v12 = vpop.permute.xlu0 %582 }
 0x18f   : > { %v588_v13 = vsel %vm470_vm2, %v583_v12, 0 }
 0x193   : > { %1488 = vmatmul.mubr.msk.bf16.vlgmr.msra.gmra.mrb[4].mxu1 %vm470_vm2, %v1952_v6 }
 0x194   : > { %1498 = vmatpush3.bf16.xpose.msra.mxu1 %v588_v13  ;;  %1499 = vmatprep.mubr.msk.bf16.mxu1 %vm1770_vm0, %v1769_v0 }
 0x195   : > { %1509 = vmatprep.subr.bf16.mxu1 %v1769_v0 }
 0x19b   : > { %1500 = vmatmul.mubr.msk.bf16.vlgmr.msra.gmra.mrb[8].mxu1 %vm470_vm2, %v581_v14 }
 0x19c   : > { %1511 = vmatprep.mubr.msk.bf16.mxu1 %vm1770_vm0, %v1769_v0  ;;  %1510 = vmatpush3.bf16.msra.mxu1 %v697_v50  ;;  %v1422_v50 = vld [vmem:[%s2139_s2 + $0xc] sm:$0xf] }
 0x19d   : > { %1521 = vmatprep.subr.bf16.mxu1 %v1769_v0 }
 0x266   : > { %v511_v15 = vpop.f32.mrb[4].mxu1 }
 0x267   : > { %v1489_v16 = vpop.f32.mrb[5].mxu1  ;;  %v517_v17 = vsel %vm470_vm2, %v511_v15, -inf }
 0x268   : > { %518 = vmax.xlane.f32.xlu1 %v517_v17  ;;  %v514_v18 = vpop.f32.mrb[6].mxu1 }
 0x269   : > { %v1490_v19 = vpop.f32.mrb[7].mxu1 }
 0x26e   : > { %v624_v20 = vpop.f32.mrb[8].mxu1 }
 0x26f   : > { %v1501_v21 = vpop.f32.mrb[9].mxu1  ;;  %v630_v22 = vsel %vm470_vm2, %v624_v20, -inf }
 0x270   : > { %631 = vmax.xlane.f32.xlu0 %v630_v22  ;;  %v627_v23 = vpop.f32.mrb[10].mxu1 }
 0x271   : > { %v1502_v24 = vpop.f32.mrb[11].mxu1 }
 0x2f5   : > { %v519_v25 = vpop.xlane.xlu1 %518 }
 0x2f6   : > { %v520_v26 = vsub.f32 %v511_v15, %v519_v25 }
 0x2f8   : > { %v521_v27 = vmul.f32 1.442695, %v520_v26 }
 0x2fa   : > { %1650 = vpow2.f32 %v521_v27 }
 0x2fd   : > { %v632_v28 = vpop.xlane.xlu0 %631 }
 0x2fe   : > { %v633_v29 = vsub.f32 %v624_v20, %v632_v28 }
 0x300   : > { %v634_v30 = vmul.f32 1.442695, %v633_v29 }
 0x302   : > { %1652 = vpow2.f32 %v634_v30 }
 0x304   : > { %v1651_v31 = vpop.eup %1650 }
 0x305   : > { %v523_v32 = vsel %vm470_vm2, %v1651_v31, 0.0 }
 0x306   : > { %524 = vadd.xlane.f32.xlu0 %v523_v32 }
 0x30c   : > { %v1653_v33 = vpop.eup %1652 }
 0x30d   : > { %v636_v34 = vsel %vm470_vm2, %v1653_v33, 0.0 }
 0x30e   : > { %637 = vadd.xlane.f32.xlu1 %v636_v34 }
 0x31c   : > { %529 = vrot.lane.b32.xlu0 %v1952_v6, %s1774_s29 }
 0x31f   : > { %642 = vrot.lane.b32.xlu1 %v1952_v6, %s1775_s12 }
 0x320   : > { %785 = vrot.lane.b32.xlu0 %v1952_v6, %s1776_s13  ;;  %s1781_s13 = smov 40  }
 0x323   : > { %787 = vrot.lane.b32.xlu1 %v1952_v6, %s1777_s16 }
 0x393   : > { %v525_v35 = vpop.xlane.xlu0 %524 }
 0x394   : > { %1654 = vrcp.f32 %v525_v35 }
 0x397   : > { %v530_v36 = vpop.permute.xlu0 %529 }
 0x398   : > { %v536_v37 = vsel %vm534_vm3, %v530_v36, 0 }
 0x399   : > { %1492 = vmatpush3.bf16.msra.mxu0 %v536_v37 }
 0x39a   : > { %1503 = vmatprep.subr.bf16.mxu0 %v1769_v0 }
 0x39b   : > { %v638_v38 = vpop.xlane.xlu1 %637  ;;  %v786_v63 = vpop.permute.xlu0 %785 }
 0x39c   : > { %1656 = vrcp.f32 %v638_v38 }
 0x39e   : > { %v1655_v39 = vpop.eup %1654 }
 0x39f   : > { %v527_v40 = vmul.f32 %v1655_v39, %v1651_v31  ;;  %v643_v41 = vpop.permute.xlu1 %642  ;;  %v1418_v31 = vld [vmem:[%s2139_s2 + $0x8] sm:$0xf] }
 0x3a0   : > { %v648_v43 = vsel %vm534_vm3, %v643_v41, 0  ;;  %v902_v32 = vsel %vm534_vm3, %v1418_v31, 0  ;;  %v1426_v31 = vld [vmem:[%s2141_s4] ss:$0 sm:$0xff] }
 0x3a1   : > { %v528_v42 = vpack.c.bf16 %v527_v40, %v527_v40 }
 0x3a3   : > { %1494 = vmatmul.mubr.msk.bf16.vlgmr.msra.gmra.mrb[0].mxu0 %vm470_vm2, %v528_v42  ;;  %v788_v56 = vpop.permute.xlu1 %787 }
 0x3a4   : > { %1504 = vmatpush3.bf16.msra.mxu0 %v648_v43  ;;  %1505 = vmatprep.mubr.msk.bf16.mxu0 %vm1770_vm0, %v1769_v0  ;;  %v793_v61 = vsel %vm470_vm2, %v788_v56, 0 }
 0x3a5   : > { %1515 = vmatprep.subr.bf16.mxu0 %v1769_v0 }
 0x3a6   : > { %v1657_v44 = vpop.eup %1656 }
 0x3a7   : > { %v640_v45 = vmul.f32 %v1657_v44, %v1653_v33 }
 0x3a9   : > { %v641_v46 = vpack.c.bf16 %v640_v45, %v640_v45 }
 0x3ab   : > { %1506 = vmatmul.mubr.msk.bf16.vlgmr.msra.gmra.mrb[4].mxu0 %vm470_vm2, %v641_v46 }
 0x3ac   : > { %1517 = vmatprep.mubr.msk.bf16.mxu0 %vm1770_vm0, %v1769_v0  ;;  %1516 = vmatpush3.bf16.msra.mxu0 %v743_v48 }
 0x3ad   : > { %1527 = vmatprep.subr.bf16.mxu0 %v1769_v0 }
 0x476   : > { %v572_v51 = vpop.f32.mrb[0].mxu0 }
 0x477   : > { %v578_v52 = vpack.c.bf16 %v572_v51, %v572_v51  ;;  %v1495_v53 = vpop.f32.mrb[1].mxu0 }
 0x478   : > { %v575_v54 = vpop.f32.mrb[2].mxu0 }
 0x479   : > { %v1496_v55 = vpop.f32.mrb[3].mxu0  ;;  %1518 = vmatmul.mubr.msk.bf16.vlgmr.msra.gmra.mrb[8].mxu0 %vm470_vm2, %v578_v52 }
 0x47a   : > { %1529 = vmatprep.mubr.msk.bf16.mxu0 %vm1770_vm0, %v1769_v0 }
 0x47e   : > { %v684_v57 = vpop.f32.mrb[4].mxu0 }
 0x47f   : > { %v690_v58 = vpack.c.bf16 %v684_v57, %v684_v57  ;;  %v1507_v59 = vpop.f32.mrb[5].mxu0 }
 0x480   : > { %v687_v60 = vpop.f32.mrb[6].mxu0 }
 0x481   : > { %v1508_v62 = vpop.f32.mrb[7].mxu0  ;;  %1512 = vmatmul.mubr.msk.bf16.vlgmr.msra.gmra.mrb[12].mxu1 %vm470_vm2, %v690_v58 }
 0x482   : > { %1522 = vmatpush3.bf16.xpose.msra.mxu1 %v793_v61  ;;  %1523 = vmatprep.mubr.msk.bf16.mxu1 %vm1770_vm0, %v1769_v0 }
 0x483   : > { %1533 = vmatprep.subr.bf16.mxu1 %v1769_v0 }
 0x489   : > { %1524 = vmatmul.mubr.msk.bf16.vlgmr.msra.gmra.mrb[16].mxu1 %vm470_vm2, %v786_v63 }
 0x48a   : > { %1535 = vmatprep.mubr.msk.bf16.mxu1 %vm1770_vm0, %v1769_v0  ;;  %1534 = vmatpush3.bf16.msra.mxu1 %v902_v32 }
 0x48b   : > { %1545 = vmatprep.subr.bf16.mxu1 %v1769_v0 }
 0x54c   : > { %v779_v1 = vpop.f32.mrb[8].mxu0 }
 0x54d   : > { %v1519_v2 = vpop.f32.mrb[9].mxu0 }
 0x54e   : > { %v782_v4 = vpop.f32.mrb[10].mxu0 }
 0x54f   : > { %v1520_v5 = vpop.f32.mrb[11].mxu0 }
 0x554   : > { %v733_v7 = vpop.f32.mrb[12].mxu1 }
 0x555   : > { %v2007_v8 = vadd.f32 %v779_v1, %v733_v7  ;;  %v1513_v9 = vpop.f32.mrb[13].mxu1 }
 0x556   : > { %v736_v10 = vpop.f32.mrb[14].mxu1 }
 0x557   : > { %v1514_v11 = vpop.f32.mrb[15].mxu1 }
 0x55c   : > { %v829_v12 = vpop.f32.mrb[16].mxu1 }
 0x55d   : > { %v1525_v13 = vpop.f32.mrb[17].mxu1  ;;  %v835_v14 = vsel %vm470_vm2, %v829_v12, -inf }
 0x55e   : > { %836 = vmax.xlane.f32.xlu1 %v835_v14  ;;  %v832_v15 = vpop.f32.mrb[18].mxu1 }
 0x55f   : > { %v1526_v16 = vpop.f32.mrb[19].mxu1 }
 0x560   : > { %v1644_v16 = vld [vmem:[#allocation2] sm:$0xff]  }
 0x56f   : > { %947 = vrot.lane.b32.xlu1 %v1952_v6, %s1778_s22 }
 0x573   : > { %945 = vrot.lane.b32.xlu1 %v1952_v6, %s1779_s24 }
 0x5eb   : > { %v837_v17 = vpop.xlane.xlu1 %836 }
 0x5ec   : > { %v838_v18 = vsub.f32 %v829_v12, %v837_v17  ;;  %v1645_v17 = vld [vmem:[#allocation2 + $0x8] sm:$0xff]  }
 0x5ee   : > { %v839_v19 = vmul.f32 1.442695, %v838_v18  ;;  %v1647_v18 = vld [vmem:[%s2142_s5 + $0x8] sm:$0xff]  }
 0x5ef   : > { %v948_v27 = vpop.permute.xlu1 %947 }
 0x5f0   : > { %1658 = vpow2.f32 %v839_v19  ;;  %v953_v29 = vsel %vm470_vm2, %v948_v27, 0 }
 0x5f3   : > { %v946_v30 = vpop.permute.xlu1 %945 }
 0x5fa   : > { %v1659_v20 = vpop.eup %1658 }
 0x5fb   : > { %v841_v21 = vsel %vm470_vm2, %v1659_v20, 0.0 }
 0x5fc   : > { %842 = vadd.xlane.f32.xlu0 %v841_v21 }
 0x612   : > { %847 = vrot.lane.b32.xlu0 %v1952_v6, %s1780_s26  ;;  %s390_s26 = sand.u32 1, %s1756_s18  }
 0x613   : > { %s1404_s29 = sshll.u32 %s390_s26, 3  ;;  %s1314_s12 = scalar_lea.sflag [#allocation4], %s390_s26 }
 0x614   : > { %s392_s14 = scalar_lea.vmem [#allocation5], %s1404_s29  ;;  %s1702_s29 = sshll.u32 %s1782_s21, 4  ;;  %s1703_s29 = int_to_ptr.vmem [resolvable:$false] %s1702_s29 }
 0x615   : > { %s1327_s15 = sshll.u32 %s392_s14, 4  ;;  %s1704_s16 = scalar_lea.vmem %s1703_s29, 256  ;;  %s2096_s15 = int_to_ptr.vmem [resolvable:$true] %s1327_s15 }
 0x616   : > { %p1705_p2 = scmp.lt.s32.totalorder %s2096_s15, %s1703_s29 }
 0x689   : > { %v843_v22 = vpop.xlane.xlu0 %842 }
 0x68a   : > { %1660 = vrcp.f32 %v843_v22 }
 0x68d   : > { %v848_v23 = vpop.permute.xlu0 %847 }
 0x68e   : > { %v853_v24 = vsel %vm534_vm3, %v848_v23, 0  ;;  %v1424_v23 = vld [vmem:[%s2144_s7] ss:$0 sm:$0xff] }
 0x68f   : > { %1528 = vmatpush3.bf16.msra.mxu0 %v853_v24 }
 0x690   : > { %1539 = vmatprep.subr.bf16.mxu0 %v1769_v0 }
 0x694   : > { %v1661_v25 = vpop.eup %1660 }
 0x695   : > { %v845_v26 = vmul.f32 %v1661_v25, %v1659_v20  ;;  %v1425_v25 = vld [vmem:[%s2145_s8] ss:$0 sm:$0xff] }
 0x697   : > { %v846_v28 = vpack.c.bf16 %v845_v26, %v845_v26 }
 0x699   : > { %1530 = vmatmul.mubr.msk.bf16.vlgmr.msra.gmra.mrb[12].mxu0 %vm470_vm2, %v846_v28 }
 0x69a   : > { %1540 = vmatpush3.bf16.xpose.msra.mxu0 %v953_v29  ;;  %1541 = vmatprep.mubr.msk.bf16.mxu0 %vm1770_vm0, %v1769_v0  ;;  %v1648_v29 = vld [vmem:[%s2142_s5 + $0x10] sm:$0xff]  }
 0x69b   : > { %1551 = vmatprep.subr.bf16.mxu0 %v1769_v0 }
 0x6a1   : > { %1542 = vmatmul.mubr.msk.bf16.vlgmr.msra.gmra.mrb[16].mxu0 %vm470_vm2, %v946_v30  ;;  %v1649_v30 = vld [vmem:[%s2142_s5 + $0x18] sm:$0xff]  }
 0x6a2   : > { %1553 = vmatprep.mubr.msk.bf16.mxu0 %vm1770_vm0, %v1769_v0 }
 0x76c   : > { %v889_v33 = vpop.f32.mrb[12].mxu0 }
 0x76d   : > { %v895_v34 = vpack.c.bf16 %v889_v33, %v889_v33  ;;  %v1531_v35 = vpop.f32.mrb[13].mxu0 }
 0x76e   : > { %v892_v36 = vpop.f32.mrb[14].mxu0 }
 0x76f   : > { %v1532_v37 = vpop.f32.mrb[15].mxu0  ;;  %1536 = vmatmul.mubr.msk.bf16.vlgmr.msra.gmra.mrb[20].mxu1 %vm470_vm2, %v895_v34 }
 0x770   : > { %1547 = vmatprep.mubr.msk.bf16.mxu1 %vm1770_vm0, %v1769_v0 }
 0x774   : > { %v989_v38 = vpop.f32.mrb[16].mxu0 }
 0x775   : > { %v1543_v39 = vpop.f32.mrb[17].mxu0  ;;  %v995_v40 = vsel %vm470_vm2, %v989_v38, -inf }
 0x776   : > { %996 = vmax.xlane.f32.xlu0 %v995_v40  ;;  %v992_v41 = vpop.f32.mrb[18].mxu0 }
 0x777   : > { %v1544_v42 = vpop.f32.mrb[19].mxu0 }
 0x78c   : > { %1007 = vrot.lane.b32.xlu0 %v1952_v6, %s1781_s13  ;;  %v1062_v6 = vsel %vm534_vm3, %v1422_v50, 0  ;;  %s1698_s13 = scalar_lea.vmem %s2096_s15, 128 }
 0x78d   : > { %1552 = vmatpush3.bf16.msra.mxu0 %v1062_v6  ;;  %p1699_p6 = scmp.ne.s32.totalorder %s2096_s15, %s1698_s13  ;;  %p1706_p3 = scmp.lt.s32.totalorder %s1704_s16, %s1698_s13 }
 0x78e   : > { %1565 = vmatprep.subr.bf16.mxu0 %v1769_v0 }
 0x78f   : > { %p1700_p10 = pnand %p1699_p6, %p2162_p9  ;;  %p1707_p4 = por %p1706_p3, %p1705_p2 }
 0x791   : > { %p1701_p12 = pneg %p1700_p10 }
 0x793   : > { %p1708_p7 = pnand %p1707_p4, %p1701_p12 }
 0x803   : > { %v997_v43 = vpop.xlane.xlu0 %996 }
 0x804   : > { %v998_v44 = vsub.f32 %v989_v38, %v997_v43 }
 0x806   : > { %v999_v45 = vmul.f32 1.442695, %v998_v44 }
 0x807   : > { %v1008_v46 = vpop.permute.xlu0 %1007 }
 0x808   : > { %1662 = vpow2.f32 %v999_v45  ;;  %v1013_v47 = vsel %vm534_vm3, %v1008_v46, 0 }
 0x809   : > { %1546 = vmatpush3.bf16.msra.mxu1 %v1013_v47 }
 0x80a   : > { %1557 = vmatprep.subr.bf16.mxu1 %v1769_v0 }
 0x812   : > { %v1663_v48 = vpop.eup %1662 }
 0x813   : > { %v1001_v49 = vsel %vm470_vm2, %v1663_v48, 0.0 }
 0x814   : > { %1002 = vadd.xlane.f32.xlu1 %v1001_v49 }
 0x842   : > { %v938_v51 = vpop.f32.mrb[20].mxu1 }
 0x843   : > { %v944_v52 = vadd.f32 %v938_v51, %v2007_v8  ;;  %v1537_v53 = vpop.f32.mrb[21].mxu1 }
 0x844   : > { %v941_v54 = vpop.f32.mrb[22].mxu1 }
 0x845   : > { %v1538_v55 = vpop.f32.mrb[23].mxu1  ;;  %v1436_v54 = vld [vmem:[%s2146_s9] ss:$0 sm:$0xff] }
 0x8a1   : > { %v1003_v56 = vpop.xlane.xlu1 %1002 }
 0x8a2   : > { %1664 = vrcp.f32 %v1003_v56  ;;  %v1437_v56 = vld [vmem:[%s2147_s10] ss:$0 sm:$0xff] }
 0x8ac   : > { %v1665_v57 = vpop.eup %1664 }
 0x8ad   : > { %v1005_v58 = vmul.f32 %v1665_v57, %v1663_v48 }
 0x8af   : > { %v1006_v59 = vpack.c.bf16 %v1005_v58, %v1005_v58 }
 0x8b1   : > { %1548 = vmatmul.mubr.msk.bf16.vlgmr.msra.gmra.mrb[24].mxu1 %vm470_vm2, %v1006_v59 }
 0x8b2   : > { %1561 = vmatprep.mubr.msk.bf16.mxu1 %vm1770_vm0, %v1769_v0  ;;  %1558 = vmatpush3.bf16.msra.mxu1 %v1644_v16 }
 0x8b3   : > { %1559 = vmatprep.subr.bf16.mxu1 %v1769_v0 }
 0x8b6   : > { %1560 = vmatpush3.bf16.msra.mxu1 %v1645_v17 }
 0x984   : > { %v1049_v60 = vpop.f32.mrb[24].mxu1 }
 0x985   : > { %v1055_v61 = vpack.c.bf16 %v1049_v60, %v1049_v60  ;;  %v1549_v62 = vpop.f32.mrb[25].mxu1 }
 0x986   : > { %v1052_v63 = vpop.f32.mrb[26].mxu1 }
 0x987   : > { %v1550_v1 = vpop.f32.mrb[27].mxu1  ;;  %1554 = vmatmul.mubr.msk.bf16.vlgmr.msra.gmra.mrb[20].mxu0 %vm470_vm2, %v1055_v61 }
 0x988   : > { %1573 = vmatprep.mubr.msk.bf16.mxu0 %vm1770_vm0, %v1769_v0 }
 0xa5a   : > { %v1098_v2 = vpop.f32.mrb[20].mxu0 }
 0xa5b   : > { %v1104_v4 = vadd.f32 %v1098_v2, %v944_v52  ;;  %v1555_v5 = vpop.f32.mrb[21].mxu0 }
 0xa5c   : > { %v1101_v7 = vpop.f32.mrb[22].mxu0 }
 0xa5d   : > { %v1556_v8 = vpop.f32.mrb[23].mxu0  ;;  %v1105_v9 = vadd.f32 %v1104_v4, %v1943_v3  ;;  %v1646_v3 = vld [vmem:[%s2142_s5] sm:$0xff]  }
 0xa5e   : > { %1566 = vmatpush3.bf16.msra.mxu0 %v1646_v3 }
 0xa5f   : > { %v1106_v10 = vsel %vm422_vm1, %v1105_v9, 0.0  ;;  %1567 = vmatprep.subr.bf16.mxu0 %v1769_v0 }
 0xa60   : > { %1107 = vadd.xlane.f32.xlu1 %v1106_v10 }
 0xa62   : > { %1568 = vmatpush3.bf16.msra.mxu0 %v1647_v18 }
 0xa63   : > { %1569 = vmatprep.subr.bf16.mxu0 %v1769_v0 }
 0xa66   : > { %1570 = vmatpush3.bf16.msra.mxu0 %v1648_v29 }
 0xa67   : > { %1571 = vmatprep.subr.bf16.mxu0 %v1769_v0  ;;  %v1430_v0 = vld [vmem:[%s2143_s6] ss:$0 sm:$0xff] }
 0xa6a   : > { %1572 = vmatpush3.bf16.msra.mxu0 %v1649_v30 }
 0xaed   : > { %v1108_v11 = vpop.xlane.xlu1 %1107 }
 0xaee   : > { %v1110_v12 = vmul.f32 0.03125, %v1108_v11 }
 0xaf0   : > { %v1111_v13 = vsub.f32 %v1105_v9, %v1110_v12 }
 0xaf2   : > { %v1112_v14 = vmul.f32 %v1111_v13, %v1111_v13 }
 0xaf4   : > { %v1113_v15 = vsel %vm422_vm1, %v1112_v14, 0.0 }
 0xaf5   : > { %1114 = vadd.xlane.f32.xlu1 %v1113_v15 }
 0xb82   : > { %v1115_v19 = vpop.xlane.xlu1 %1114 }
 0xb83   : > { %v1116_v20 = vmul.f32 0.03125, %v1115_v19 }
 0xb85   : > { %v1117_v21 = vadd.f32 1e-05, %v1116_v20 }
 0xb87   : > { %1666 = vrsqrt.f32 %v1117_v21 }
 0xb91   : > { %v1667_v22 = vpop.eup %1666 }
 0xb92   : > { %v1119_v24 = vmul.f32 %v1667_v22, %v1111_v13 }
 0xb94   : > { %v1126_v26 = vmul.f32 %v1424_v23, %v1119_v24 }
 0xb96   : > { %v1133_v27 = vadd.f32 %v1425_v25, %v1126_v26 }
 0xb98   : > { %v1134_v28 = vpack.c.bf16 %v1133_v27, %v1133_v27 }
 0xb9a   : > { %1562 = vmatmul.mubr.msk.bf16.vlgmr.msra.gmra.mrb[28].mxu1 %vm422_vm1, %v1134_v28 }
 0xc6d   : > { %v1194_v32 = vpop.f32.mrb[28].mxu1 }
 0xc6e   : > { %v1195_v33 = vadd.f32 %v1426_v31, %v1194_v32  ;;  %v1563_v34 = vpop.f32.mrb[29].mxu1 }
 0xc6f   : > { %v1197_v35 = vpop.f32.mrb[30].mxu1 }
 0xc70   : > { %v1200_v36 = vmax.f32 %v1195_v33, 0.0  ;;  %v1564_v37 = vpop.f32.mrb[31].mxu1 }
 0xc72   : > { %v1201_v38 = vpack.c.bf16 %v1200_v36, %v1200_v36 }
 0xc74   : > { %1574 = vmatmul.mubr.msk.bf16.vlgmr.msra.gmra.mrb[24].mxu0 %vm1240_vm4, %v1201_v38 }
 0xd47   : > { %v1278_v39 = vpop.f32.mrb[24].mxu0 }
 0xd48   : > { %v1279_v40 = vadd.f32 %v1430_v0, %v1278_v39  ;;  %v1575_v41 = vpop.f32.mrb[25].mxu0 }
 0xd49   : > { %v1281_v42 = vpop.f32.mrb[26].mxu0 }
 0xd4a   : > { %v1576_v43 = vpop.f32.mrb[27].mxu0  ;;  %v1284_v44 = vadd.f32 %v1279_v40, %v1133_v27 }
 0xd4c   : > { %v1285_v45 = vsel %vm422_vm1, %v1284_v44, 0.0 }
 0xd4d   : > { %1286 = vadd.xlane.f32.xlu1 %v1285_v45 }
 0xdda   : > { %v1287_v46 = vpop.xlane.xlu1 %1286 }
 0xddb   : > { %v1288_v47 = vmul.f32 0.03125, %v1287_v46 }
 0xddd   : > { %v1289_v48 = vsub.f32 %v1284_v44, %v1288_v47 }
 0xddf   : > { %v1290_v49 = vmul.f32 %v1289_v48, %v1289_v48 }
 0xde1   : > { %v1291_v50 = vsel %vm422_vm1, %v1290_v49, 0.0 }
 0xde2   : > { %1292 = vadd.xlane.f32.xlu1 %v1291_v50 }
 0xe6f   : > { %v1293_v6 = vpop.xlane.xlu1 %1292 }
 0xe70   : > { %v1294_v51 = vmul.f32 0.03125, %v1293_v6 }
 0xe72   : > { %v1295_v52 = vadd.f32 1e-05, %v1294_v51 }
 0xe74   : > { %1668 = vrsqrt.f32 %v1295_v52 }
 0xe7e   : > { %v1669_v53 = vpop.eup %1668 }
 0xe7f   : > { %v1297_v55 = vmul.f32 %v1669_v53, %v1289_v48 }
 0xe81   : > { %v1304_v57 = vmul.f32 %v1436_v54, %v1297_v55 }
 0xe83   : > { %v1311_v58 = vadd.f32 %v1437_v56, %v1304_v57 }
 0xe85   : > { %1312 = vst.msk [vmem:[%s392_s14] sm:$0xff] %vm422_vm1, %v1311_v58 }
 0xe86   : > { %1711 = shalt.err (!%p1708_p7)
}
 0xe87   : > { %s1712_s26 = scalar_lea.hbm %s2094_s0, 128  ;;  %s1716_s14 = scalar_lea.hbm %s2148_s11, 256 }
 0xe88   : > { %p1713_p8 = scmp.ne.s32.totalorder %s2094_s0, %s1712_s26  ;;  %p1717_p1 = scmp.lt.u32.totalorder %s2094_s0, %s2148_s11 }
 0xe89   : > { %p1718_p0 = scmp.lt.u32.totalorder %s1716_s14, %s1712_s26  ;;  %p1720_p6 = scmp.lt.u32.totalorder %s1712_s26, %s2094_s0 }
 0xe8a   : > { %p1714_p11 = pnand %p1713_p8, %p2162_p9 }
 0xe8b   : > { %p1719_p5 = por %p1718_p0, %p1717_p1 }
 0xe8c   : > { %p1715_p13 = pneg %p1714_p11 }
 0xe8d   : > { %p1721_p10 = por %p1720_p6, %p1719_p5 }
 0xe8f   : > { %p1722_p12 = pnand %p1721_p10, %p1715_p13 }
 0xe91   : > { %1725 = shalt.err (!%p1722_p12)
}
 0xe92   : > { %1581 = dma.vmem_to_hbm [thread:$0]  (%p2162_p9), %s2096_s15, 128, %s2094_s0, %s1314_s12  }
 0xe93 PF: > { %p1593_p2 = scmp.ge.s32.totalorder %s1764_s20, 2  ;;  %s1339_s13 = sand.u32 1, %s1752_s17  }
 0xe94   : > { %p2163_p3 = scmp.ne.s32.totalorder %s2155_s28, 0  ;;  %s1340_s21 = scalar_lea.sflag [#allocation4], %s1339_s13 }
 0xe96   : > { %p1588_p4 = pnand %p1593_p2, %p2163_p3 }
 0xe98   : > { %1747 = dma.done.wait (!%p1588_p4), %s1340_s21, 128  }
 0xe99   : > { %1749 = vsyncadd (!%p1588_p4), %s1340_s21, 4294967168  ;;  %s2164_s29 = sld [smem:[#allocation8_spill]]  ;;  %p22_p7 = scmp.ge.s32.totalorder %s1868_s23, 4  }
 0xe9a   : > { %s2165_s17 = smov %s1756_s18  ;;  %s2166_s18 = smov %s1760_s19 }
 0xe9b   : > { %s2168_s20 = smov %s1868_s23  ;;  %24 = sbr.rel (!%p22_p7) target bundleno = 6 (0x6), region = 107 }
 0xe9f   : > { %s2167_s19 = smov %s2164_s29 }
 0xea2   :  { %1345 = vsyncpa [#allocation3], 1 }
 0xea3   :  { %1347 = vsyncpa [#allocation3 + $0x1], 1 }
 0xea4   :  { %1348 = vsyncpa [#allocation4], 1 }
 0xea5   :  { %1350 = vsyncpa [#allocation4 + $0x1], 1 }

// kernel: tpu_custom_call.1
= control target key start
LH: loop header
LB: loop body
LE: loop exit
PB: predicated region body
PF: predicated region fallthrough
CT: control target
= control target key end

     0   :  { %s2137_s0 = inlined_call_operand.vmem [shape: f32[2,8,32], index: 0, kind: input, shape index: {}]   ;;  %s2138_s1 = inlined_call_operand.vmem [shape: bf16[32,96], index: 1, kind: input, shape index: {}]   ;;  %s2139_s2 = inlined_call_operand.vmem [shape: bf16[4,8,32], index: 2, kind: input, shape index: {}]   ;;  %s2140_s3 = inlined_call_operand.hbm [shape: bf16[32,64], index: 3, kind: input, shape index: {}]   ;;  %s2141_s4 = inlined_call_operand.vmem [shape: f32[1,64], index: 4, kind: input, shape index: {}]   ;;  %s2142_s5 = inlined_call_operand.vmem [shape: bf16[64,32], index: 5, kind: input, shape index: {}]   ;;  %s2143_s6 = inlined_call_operand.vmem [shape: f32[1,32], index: 6, kind: input, shape index: {}]   ;;  %s2144_s7 = inlined_call_operand.vmem [shape: f32[1,32], index: 7, kind: input, shape index: {}]   ;;  %s2145_s8 = inlined_call_operand.vmem [shape: f32[1,32], index: 8, kind: input, shape index: {}]   ;;  %s2146_s9 = inlined_call_operand.vmem [shape: f32[1,32], index: 9, kind: input, shape index: {}]   ;;  %s2147_s10 = inlined_call_operand.vmem [shape: f32[1,32], index: 10, kind: input, shape index: {}]   ;;  %s2148_s11 = inlined_call_operand.hbm [shape: f32[2,8,32], index: 11, kind: output, shape index: {}]  }
   0x1   :  { %2152 = sst [smem:[#allocation9_spill]] %s2137_s0 }
   0x2   :  { %16 = vsyncpa [#allocation3], 0 }
   0x3   :  { %17 = vsyncpa [#allocation4], 0 }
   0x4   :  { %19 = vsyncpa [#allocation4 + $0x1], 0  ;;  %s1843_s17 = smov 0   ;;  %s1845_s18 = smov 0  }
   0x5   :  { %s1847_s19 = smov 0   ;;  %s1849_s20 = smov 0  }
   0x6 LB: > { %s1864_s21 = sadd.s32 4294967295, %s1764_s20   ;;  %s1398_s22 = sadd.s32 4294967294, %s1764_s20   ;;  %s1764_s20 = sphi %s1849_s20, %s2168_s20   ;;  %s1760_s19 = sphi %s1847_s19, %s2167_s19   ;;  %s1756_s18 = sphi %s1845_s18, %s2166_s18   ;;  %s1752_s17 = sphi %s1843_s17, %s2165_s17  }
   0x7   : > { %s1868_s23 = sadd.s32 1, %s1764_s20   ;;  %s268_s24 = sadd.s32 1, %s1760_s19 }
   0x8   : > { %s265_s25 = ssub.s32 %s1764_s20, %s1868_s23  ;;  %p278_p0 = scmp.ne.s32.totalorder %s1760_s19, %s1756_s18 }
   0x9   : > { %p266_p1 = scmp.eq.s32.totalorder %s265_s25, 0  ;;  %p279_p2 = scmp.eq.s32.totalorder %s1864_s21, 1 }
   0xa   : > { %p284_p3 = scmp.ne.s32.totalorder %s1756_s18, %s1752_s17  ;;  %p285_p4 = scmp.eq.s32.totalorder %s1398_s22, 1 }
   0xb   : > { %s1879_s26 = scalar_select %p266_p1, %s1760_s19, %s268_s24  }
   0xc   : > { %p1881_p5 = por %p279_p2, %p278_p0  ;;  %p1885_p6 = por %p285_p4, %p284_p3 }
   0xd   : > { %2153 = sst [smem:[#allocation8_spill]] %s1879_s26  ;;  %p1399_p7 = scmp.ge.s32.totalorder %s1764_s20, 1 }
   0xe   : > { %s2154_s27 = scalar_select %p1881_p5, 1, 0 }
   0xf   : > { %s2155_s28 = scalar_select %p1885_p6, 1, 0 }
  0x10   : > { %p292_p8 = scmp.lt.s32.totalorder %s1764_s20, 3  ;;  %p2149_p9 = scmp.eq.s32.totalorder %s1864_s21, 0 }
  0x11   : > { %s1766_s30 = smov [#allocation2]   ;;  %s1670_s16 = scalar_lea.hbm %s2140_s3, 256 }
  0x12   : > { %p1892_p10 = pnand %p1399_p7, %p292_p8  ;;  %s310_s12 = sshll.u32 %s1766_s30, 4  ;;  %s311_s12 = int_to_ptr.vmem [resolvable:$true] %s310_s12 }
  0x13   : > { %p1671_p13 = scmp.ne.s32.totalorder %s2140_s3, %s1670_s16  ;;  %p1677_p3 = scmp.lt.u32.totalorder %s1670_s16, %s2140_s3 }
  0x14   : > { %s2156_s29 = scalar_select %p1892_p10, 1, 0 }
  0x15   : > { %p1583_p11 = pneg %p1892_p10 }
  0x17   : > { %p1900_p12 = pnand %p2149_p9, %p1583_p11 }
  0x19   : > { %p1672_p0 = pneg %p1900_p12 }
  0x1b   : > { %p1673_p1 = pnand %p1672_p0, %p1671_p13 }
  0x1d   : > { %p1674_p2 = pneg %p1673_p1 }
  0x1f   : > { %p1679_p4 = pnand %p1677_p3, %p1674_p2 }
  0x21   : > { %1682 = shalt.err (!%p1679_p4)
}
  0x22   : > { %s1683_s26 = scalar_lea.vmem %s311_s12, 256  ;;  %p1691_p9 = scmp.lt.s32.totalorder %s311_s12, %s311_s12 }
  0x23   : > { %p1684_p7 = scmp.ne.s32.totalorder %s311_s12, %s1683_s26  ;;  %p1692_p6 = scmp.lt.s32.totalorder %s1683_s26, %s1683_s26 }
  0x25   : > { %p1686_p8 = pnand %p1684_p7, %p1672_p0  ;;  %p1693_p5 = por %p1692_p6, %p1691_p9 }
  0x27   : > { %p1687_p11 = pneg %p1686_p8 }
  0x29   : > { %p1694_p10 = pnand %p1693_p5, %p1687_p11 }
  0x2b   : > { %1697 = shalt.err (!%p1694_p10)
}
  0x2c   : > { %s1767_s14 = smov 64   ;;  %s1768_s15 = smov 4  }
  0x2d   : > { %1586 = dma.hbm_to_vmem [thread:$0]  (!%p1900_p12), %s2140_s3, 256, %s311_s12, [#allocation3], %s1767_s14, %s1767_s14, %s1768_s15  }
  0x2e   : > { %p2158_p13 = scmp.ne.s32.totalorder %s2156_s29, 0 }
  0x2f   : > { %p2159_p1 = scmp.eq.s32.totalorder (!%p2158_p13), %s1864_s21, 0 }
  0x30   : > { %354 = sbr.rel (%p2158_p13) target bundleno = 3731 (0xe93), region = 64 }
  0x37   : > { %1743 = dma.done.wait (%p2159_p1), [#allocation3], 256   ;;  %p2160_p0 = pmov %p2159_p1 }
  0x38   : > { %p393_p5 = scmp.lt.s32.totalorder %s1864_s21, 1  ;;  %v1769_v0 = vmov 0.0   ;;  %vm1770_vm0 = vmmov 0   ;;  %s2161_s0 = sld [smem:[#allocation9_spill]]  ;;  %v1642_v1 = vld [vmem:[%s2138_s1] sm:$0xff]   ;;  %v1643_v2 = vld [vmem:[%s2138_s1 + $0x8] sm:$0xff]  }
  0x39   : > { %1745 = vsyncadd (%p2160_p0), [#allocation3], 4294967040  ;;  %1477 = vmatprep.subr.bf16.mxu1 %v1769_v0  ;;  %1481 = vmatprep.mubr.msk.bf16.mxu1 %vm1770_vm0, %v1769_v0  ;;  %vm422_vm1 = vcmask 261120   ;;  %s1771_s22 = smov 120   ;;  %s1772_s24 = smov 96   ;;  %vm470_vm2 = vcmask 64512  }
  0x3a   : > { %s394_s26 = scalar_select %p393_p5, %s1864_s21, 1  ;;  %1491 = vmatprep.subr.bf16.mxu0 %v1769_v0  ;;  %1493 = vmatprep.mubr.msk.bf16.mxu0 %vm1770_vm0, %v1769_v0  ;;  %vm534_vm3 = vcmask 1043456   ;;  %v579_v47 = vld [vmem:[%s2139_s2] sm:$0xf]  ;;  %v1413_v49 = vld [vmem:[%s2139_s2 + $0x4] sm:$0xf] }
  0x3b   : > { %1478 = vmatpush3.bf16.msra.mxu1 %v1642_v1  ;;  %s1775_s12 = smov 56   ;;  %s1776_s13 = smov 112   ;;  %v743_v48 = vsel %vm534_vm3, %v579_v47, 0  ;;  %v697_v50 = vsel %vm534_vm3, %v1413_v49, 0  ;;  %vm1240_vm4 = vcmask 523264  }
  0x3c   : > { %s1405_s29 = sshll.u32 %s394_s26, 3  ;;  %1479 = vmatprep.subr.bf16.mxu1 %v1769_v0  ;;  %s1773_s26 = smov 88  }
  0x3d   : > { %s1439_s30 = sshll.u32 %s1864_s21, 7  ;;  %p2162_p9 = scmp.ne.s32.totalorder %s2154_s27, 0 }
  0x3e   : > { %s396_s16 = scalar_lea.vmem %s2161_s0, %s1405_s29  ;;  %s1774_s29 = smov 64  }
  0x3f   : > { %v1943_v3 = vld [vmem:[%s396_s16] sm:$0xff]  ;;  %1480 = vmatpush3.bf16.msra.mxu1 %v1643_v2  ;;  %s1777_s16 = smov 80   ;;  %s2094_s0 = scalar_lea.hbm %s2148_s11, %s1439_s30 }
  0x40   : > { %v405_v4 = vpack.c.bf16 %v1943_v3, %v1943_v3  ;;  %1485 = vmatprep.subr.bf16.mxu1 %v1769_v0  ;;  %s1782_s21 = smov [#allocation5]  }
  0x42   : > { %1482 = vmatmul.mubr.msk.bf16.vlgmr.msra.gmra.mrb[0].mxu1 %vm422_vm1, %v405_v4 }
  0x43   : > { %1487 = vmatprep.mubr.msk.bf16.mxu1 %vm1770_vm0, %v1769_v0 }
 0x115   : > { %v460_v5 = vpop.f32.mrb[0].mxu1 }
 0x116   : > { %v1952_v6 = vpack.c.bf16 %v460_v5, %v460_v5  ;;  %v1483_v7 = vpop.f32.mrb[1].mxu1 }
 0x117   : > { %v463_v8 = vpop.f32.mrb[2].mxu1 }
 0x118   : > { %580 = vrot.lane.b32.xlu1 %v1952_v6, %s1771_s22  ;;  %468 = vrot.lane.b32.xlu0 %v1952_v6, %s1772_s24  ;;  %v1484_v9 = vpop.f32.mrb[3].mxu1  ;;  %s1778_s22 = smov 72   ;;  %s1779_s24 = smov 104  }
 0x11c   : > { %582 = vrot.lane.b32.xlu0 %v1952_v6, %s1773_s26  ;;  %s1780_s26 = smov 48  }
 0x18a   : > { %v469_v10 = vpop.permute.xlu0 %468  ;;  %v581_v14 = vpop.permute.xlu1 %580 }
 0x18b   : > { %v475_v11 = vsel %vm470_vm2, %v469_v10, 0 }
 0x18c   : > { %1486 = vmatpush3.bf16.xpose.msra.mxu1 %v475_v11 }
 0x18d   : > { %1497 = vmatprep.subr.bf16.mxu1 %v1769_v0 }
 0x18e   : > { %v583_v12 = vpop.permute.xlu0 %582 }
 0x18f   : > { %v588_v13 = vsel %vm470_vm2, %v583_v12, 0 }
 0x193   : > { %1488 = vmatmul.mubr.msk.bf16.vlgmr.msra.gmra.mrb[4].mxu1 %vm470_vm2, %v1952_v6 }
 0x194   : > { %1498 = vmatpush3.bf16.xpose.msra.mxu1 %v588_v13  ;;  %1499 = vmatprep.mubr.msk.bf16.mxu1 %vm1770_vm0, %v1769_v0 }
 0x195   : > { %1509 = vmatprep.subr.bf16.mxu1 %v1769_v0 }
 0x19b   : > { %1500 = vmatmul.mubr.msk.bf16.vlgmr.msra.gmra.mrb[8].mxu1 %vm470_vm2, %v581_v14 }
 0x19c   : > { %1511 = vmatprep.mubr.msk.bf16.mxu1 %vm1770_vm0, %v1769_v0  ;;  %1510 = vmatpush3.bf16.msra.mxu1 %v697_v50  ;;  %v1422_v50 = vld [vmem:[%s2139_s2 + $0xc] sm:$0xf] }
 0x19d   : > { %1521 = vmatprep.subr.bf16.mxu1 %v1769_v0 }
 0x266   : > { %v511_v15 = vpop.f32.mrb[4].mxu1 }
 0x267   : > { %v1489_v16 = vpop.f32.mrb[5].mxu1  ;;  %v517_v17 = vsel %vm470_vm2, %v511_v15, -inf }
 0x268   : > { %518 = vmax.xlane.f32.xlu1 %v517_v17  ;;  %v514_v18 = vpop.f32.mrb[6].mxu1 }
 0x269   : > { %v1490_v19 = vpop.f32.mrb[7].mxu1 }
 0x26e   : > { %v624_v20 = vpop.f32.mrb[8].mxu1 }
 0x26f   : > { %v1501_v21 = vpop.f32.mrb[9].mxu1  ;;  %v630_v22 = vsel %vm470_vm2, %v624_v20, -inf }
 0x270   : > { %631 = vmax.xlane.f32.xlu0 %v630_v22  ;;  %v627_v23 = vpop.f32.mrb[10].mxu1 }
 0x271   : > { %v1502_v24 = vpop.f32.mrb[11].mxu1 }
 0x2f5   : > { %v519_v25 = vpop.xlane.xlu1 %518 }
 0x2f6   : > { %v520_v26 = vsub.f32 %v511_v15, %v519_v25 }
 0x2f8   : > { %v521_v27 = vmul.f32 1.442695, %v520_v26 }
 0x2fa   : > { %1650 = vpow2.f32 %v521_v27 }
 0x2fd   : > { %v632_v28 = vpop.xlane.xlu0 %631 }
 0x2fe   : > { %v633_v29 = vsub.f32 %v624_v20, %v632_v28 }
 0x300   : > { %v634_v30 = vmul.f32 1.442695, %v633_v29 }
 0x302   : > { %1652 = vpow2.f32 %v634_v30 }
 0x304   : > { %v1651_v31 = vpop.eup %1650 }
 0x305   : > { %v523_v32 = vsel %vm470_vm2, %v1651_v31, 0.0 }
 0x306   : > { %524 = vadd.xlane.f32.xlu0 %v523_v32 }
 0x30c   : > { %v1653_v33 = vpop.eup %1652 }
 0x30d   : > { %v636_v34 = vsel %vm470_vm2, %v1653_v33, 0.0 }
 0x30e   : > { %637 = vadd.xlane.f32.xlu1 %v636_v34 }
 0x31c   : > { %529 = vrot.lane.b32.xlu0 %v1952_v6, %s1774_s29 }
 0x31f   : > { %642 = vrot.lane.b32.xlu1 %v1952_v6, %s1775_s12 }
 0x320   : > { %785 = vrot.lane.b32.xlu0 %v1952_v6, %s1776_s13  ;;  %s1781_s13 = smov 40  }
 0x323   : > { %787 = vrot.lane.b32.xlu1 %v1952_v6, %s1777_s16 }
 0x393   : > { %v525_v35 = vpop.xlane.xlu0 %524 }
 0x394   : > { %1654 = vrcp.f32 %v525_v35 }
 0x397   : > { %v530_v36 = vpop.permute.xlu0 %529 }
 0x398   : > { %v536_v37 = vsel %vm534_vm3, %v530_v36, 0 }
 0x399   : > { %1492 = vmatpush3.bf16.msra.mxu0 %v536_v37 }
 0x39a   : > { %1503 = vmatprep.subr.bf16.mxu0 %v1769_v0 }
 0x39b   : > { %v638_v38 = vpop.xlane.xlu1 %637  ;;  %v786_v63 = vpop.permute.xlu0 %785 }
 0x39c   : > { %1656 = vrcp.f32 %v638_v38 }
 0x39e   : > { %v1655_v39 = vpop.eup %1654 }
 0x39f   : > { %v527_v40 = vmul.f32 %v1655_v39, %v1651_v31  ;;  %v643_v41 = vpop.permute.xlu1 %642  ;;  %v1418_v31 = vld [vmem:[%s2139_s2 + $0x8] sm:$0xf] }
 0x3a0   : > { %v648_v43 = vsel %vm534_vm3, %v643_v41, 0  ;;  %v902_v32 = vsel %vm534_vm3, %v1418_v31, 0  ;;  %v1426_v31 = vld [vmem:[%s2141_s4] ss:$0 sm:$0xff] }
 0x3a1   : > { %v528_v42 = vpack.c.bf16 %v527_v40, %v527_v40 }
 0x3a3   : > { %1494 = vmatmul.mubr.msk.bf16.vlgmr.msra.gmra.mrb[0].mxu0 %vm470_vm2, %v528_v42  ;;  %v788_v56 = vpop.permute.xlu1 %787 }
 0x3a4   : > { %1504 = vmatpush3.bf16.msra.mxu0 %v648_v43  ;;  %1505 = vmatprep.mubr.msk.bf16.mxu0 %vm1770_vm0, %v1769_v0  ;;  %v793_v61 = vsel %vm470_vm2, %v788_v56, 0 }
 0x3a5   : > { %1515 = vmatprep.subr.bf16.mxu0 %v1769_v0 }
 0x3a6   : > { %v1657_v44 = vpop.eup %1656 }
 0x3a7   : > { %v640_v45 = vmul.f32 %v1657_v44, %v1653_v33 }
 0x3a9   : > { %v641_v46 = vpack.c.bf16 %v640_v45, %v640_v45 }
 0x3ab   : > { %1506 = vmatmul.mubr.msk.bf16.vlgmr.msra.gmra.mrb[4].mxu0 %vm470_vm2, %v641_v46 }
 0x3ac   : > { %1517 = vmatprep.mubr.msk.bf16.mxu0 %vm1770_vm0, %v1769_v0  ;;  %1516 = vmatpush3.bf16.msra.mxu0 %v743_v48 }
 0x3ad   : > { %1527 = vmatprep.subr.bf16.mxu0 %v1769_v0 }
 0x476   : > { %v572_v51 = vpop.f32.mrb[0].mxu0 }
 0x477   : > { %v578_v52 = vpack.c.bf16 %v572_v51, %v572_v51  ;;  %v1495_v53 = vpop.f32.mrb[1].mxu0 }
 0x478   : > { %v575_v54 = vpop.f32.mrb[2].mxu0 }
 0x479   : > { %v1496_v55 = vpop.f32.mrb[3].mxu0  ;;  %1518 = vmatmul.mubr.msk.bf16.vlgmr.msra.gmra.mrb[8].mxu0 %vm470_vm2, %v578_v52 }
 0x47a   : > { %1529 = vmatprep.mubr.msk.bf16.mxu0 %vm1770_vm0, %v1769_v0 }
 0x47e   : > { %v684_v57 = vpop.f32.mrb[4].mxu0 }
 0x47f   : > { %v690_v58 = vpack.c.bf16 %v684_v57, %v684_v57  ;;  %v1507_v59 = vpop.f32.mrb[5].mxu0 }
 0x480   : > { %v687_v60 = vpop.f32.mrb[6].mxu0 }
 0x481   : > { %v1508_v62 = vpop.f32.mrb[7].mxu0  ;;  %1512 = vmatmul.mubr.msk.bf16.vlgmr.msra.gmra.mrb[12].mxu1 %vm470_vm2, %v690_v58 }
 0x482   : > { %1522 = vmatpush3.bf16.xpose.msra.mxu1 %v793_v61  ;;  %1523 = vmatprep.mubr.msk.bf16.mxu1 %vm1770_vm0, %v1769_v0 }
 0x483   : > { %1533 = vmatprep.subr.bf16.mxu1 %v1769_v0 }
 0x489   : > { %1524 = vmatmul.mubr.msk.bf16.vlgmr.msra.gmra.mrb[16].mxu1 %vm470_vm2, %v786_v63 }
 0x48a   : > { %1535 = vmatprep.mubr.msk.bf16.mxu1 %vm1770_vm0, %v1769_v0  ;;  %1534 = vmatpush3.bf16.msra.mxu1 %v902_v32 }
 0x48b   : > { %1545 = vmatprep.subr.bf16.mxu1 %v1769_v0 }
 0x54c   : > { %v779_v1 = vpop.f32.mrb[8].mxu0 }
 0x54d   : > { %v1519_v2 = vpop.f32.mrb[9].mxu0 }
 0x54e   : > { %v782_v4 = vpop.f32.mrb[10].mxu0 }
 0x54f   : > { %v1520_v5 = vpop.f32.mrb[11].mxu0 }
 0x554   : > { %v733_v7 = vpop.f32.mrb[12].mxu1 }
 0x555   : > { %v2007_v8 = vadd.f32 %v779_v1, %v733_v7  ;;  %v1513_v9 = vpop.f32.mrb[13].mxu1 }
 0x556   : > { %v736_v10 = vpop.f32.mrb[14].mxu1 }
 0x557   : > { %v1514_v11 = vpop.f32.mrb[15].mxu1 }
 0x55c   : > { %v829_v12 = vpop.f32.mrb[16].mxu1 }
 0x55d   : > { %v1525_v13 = vpop.f32.mrb[17].mxu1  ;;  %v835_v14 = vsel %vm470_vm2, %v829_v12, -inf }
 0x55e   : > { %836 = vmax.xlane.f32.xlu1 %v835_v14  ;;  %v832_v15 = vpop.f32.mrb[18].mxu1 }
 0x55f   : > { %v1526_v16 = vpop.f32.mrb[19].mxu1 }
 0x560   : > { %v1644_v16 = vld [vmem:[#allocation2] sm:$0xff]  }
 0x56f   : > { %947 = vrot.lane.b32.xlu1 %v1952_v6, %s1778_s22 }
 0x573   : > { %945 = vrot.lane.b32.xlu1 %v1952_v6, %s1779_s24 }
 0x5eb   : > { %v837_v17 = vpop.xlane.xlu1 %836 }
 0x5ec   : > { %v838_v18 = vsub.f32 %v829_v12, %v837_v17  ;;  %v1645_v17 = vld [vmem:[#allocation2 + $0x8] sm:$0xff]  }
 0x5ee   : > { %v839_v19 = vmul.f32 1.442695, %v838_v18  ;;  %v1647_v18 = vld [vmem:[%s2142_s5 + $0x8] sm:$0xff]  }
 0x5ef   : > { %v948_v27 = vpop.permute.xlu1 %947 }
 0x5f0   : > { %1658 = vpow2.f32 %v839_v19  ;;  %v953_v29 = vsel %vm470_vm2, %v948_v27, 0 }
 0x5f3   : > { %v946_v30 = vpop.permute.xlu1 %945 }
 0x5fa   : > { %v1659_v20 = vpop.eup %1658 }
 0x5fb   : > { %v841_v21 = vsel %vm470_vm2, %v1659_v20, 0.0 }
 0x5fc   : > { %842 = vadd.xlane.f32.xlu0 %v841_v21 }
 0x612   : > { %847 = vrot.lane.b32.xlu0 %v1952_v6, %s1780_s26  ;;  %s390_s26 = sand.u32 1, %s1756_s18  }
 0x613   : > { %s1404_s29 = sshll.u32 %s390_s26, 3  ;;  %s1314_s12 = scalar_lea.sflag [#allocation4], %s390_s26 }
 0x614   : > { %s392_s14 = scalar_lea.vmem [#allocation5], %s1404_s29  ;;  %s1702_s29 = sshll.u32 %s1782_s21, 4  ;;  %s1703_s29 = int_to_ptr.vmem [resolvable:$false] %s1702_s29 }
 0x615   : > { %s1327_s15 = sshll.u32 %s392_s14, 4  ;;  %s1704_s16 = scalar_lea.vmem %s1703_s29, 256  ;;  %s2096_s15 = int_to_ptr.vmem [resolvable:$true] %s1327_s15 }
 0x616   : > { %p1705_p2 = scmp.lt.s32.totalorder %s2096_s15, %s1703_s29 }
 0x689   : > { %v843_v22 = vpop.xlane.xlu0 %842 }
 0x68a   : > { %1660 = vrcp.f32 %v843_v22 }
 0x68d   : > { %v848_v23 = vpop.permute.xlu0 %847 }
 0x68e   : > { %v853_v24 = vsel %vm534_vm3, %v848_v23, 0  ;;  %v1424_v23 = vld [vmem:[%s2144_s7] ss:$0 sm:$0xff] }
 0x68f   : > { %1528 = vmatpush3.bf16.msra.mxu0 %v853_v24 }
 0x690   : > { %1539 = vmatprep.subr.bf16.mxu0 %v1769_v0 }
 0x694   : > { %v1661_v25 = vpop.eup %1660 }
 0x695   : > { %v845_v26 = vmul.f32 %v1661_v25, %v1659_v20  ;;  %v1425_v25 = vld [vmem:[%s2145_s8] ss:$0 sm:$0xff] }
 0x697   : > { %v846_v28 = vpack.c.bf16 %v845_v26, %v845_v26 }
 0x699   : > { %1530 = vmatmul.mubr.msk.bf16.vlgmr.msra.gmra.mrb[12].mxu0 %vm470_vm2, %v846_v28 }
 0x69a   : > { %1540 = vmatpush3.bf16.xpose.msra.mxu0 %v953_v29  ;;  %1541 = vmatprep.mubr.msk.bf16.mxu0 %vm1770_vm0, %v1769_v0  ;;  %v1648_v29 = vld [vmem:[%s2142_s5 + $0x10] sm:$0xff]  }
 0x69b   : > { %1551 = vmatprep.subr.bf16.mxu0 %v1769_v0 }
 0x6a1   : > { %1542 = vmatmul.mubr.msk.bf16.vlgmr.msra.gmra.mrb[16].mxu0 %vm470_vm2, %v946_v30  ;;  %v1649_v30 = vld [vmem:[%s2142_s5 + $0x18] sm:$0xff]  }
 0x6a2   : > { %1553 = vmatprep.mubr.msk.bf16.mxu0 %vm1770_vm0, %v1769_v0 }
 0x76c   : > { %v889_v33 = vpop.f32.mrb[12].mxu0 }
 0x76d   : > { %v895_v34 = vpack.c.bf16 %v889_v33, %v889_v33  ;;  %v1531_v35 = vpop.f32.mrb[13].mxu0 }
 0x76e   : > { %v892_v36 = vpop.f32.mrb[14].mxu0 }
 0x76f   : > { %v1532_v37 = vpop.f32.mrb[15].mxu0  ;;  %1536 = vmatmul.mubr.msk.bf16.vlgmr.msra.gmra.mrb[20].mxu1 %vm470_vm2, %v895_v34 }
 0x770   : > { %1547 = vmatprep.mubr.msk.bf16.mxu1 %vm1770_vm0, %v1769_v0 }
 0x774   : > { %v989_v38 = vpop.f32.mrb[16].mxu0 }
 0x775   : > { %v1543_v39 = vpop.f32.mrb[17].mxu0  ;;  %v995_v40 = vsel %vm470_vm2, %v989_v38, -inf }
 0x776   : > { %996 = vmax.xlane.f32.xlu0 %v995_v40  ;;  %v992_v41 = vpop.f32.mrb[18].mxu0 }
 0x777   : > { %v1544_v42 = vpop.f32.mrb[19].mxu0 }
 0x78c   : > { %1007 = vrot.lane.b32.xlu0 %v1952_v6, %s1781_s13  ;;  %v1062_v6 = vsel %vm534_vm3, %v1422_v50, 0  ;;  %s1698_s13 = scalar_lea.vmem %s2096_s15, 128 }
 0x78d   : > { %1552 = vmatpush3.bf16.msra.mxu0 %v1062_v6  ;;  %p1699_p6 = scmp.ne.s32.totalorder %s2096_s15, %s1698_s13  ;;  %p1706_p3 = scmp.lt.s32.totalorder %s1704_s16, %s1698_s13 }
 0x78e   : > { %1565 = vmatprep.subr.bf16.mxu0 %v1769_v0 }
 0x78f   : > { %p1700_p10 = pnand %p1699_p6, %p2162_p9  ;;  %p1707_p4 = por %p1706_p3, %p1705_p2 }
 0x791   : > { %p1701_p12 = pneg %p1700_p10 }
 0x793   : > { %p1708_p7 = pnand %p1707_p4, %p1701_p12 }
 0x803   : > { %v997_v43 = vpop.xlane.xlu0 %996 }
 0x804   : > { %v998_v44 = vsub.f32 %v989_v38, %v997_v43 }
 0x806   : > { %v999_v45 = vmul.f32 1.442695, %v998_v44 }
 0x807   : > { %v1008_v46 = vpop.permute.xlu0 %1007 }
 0x808   : > { %1662 = vpow2.f32 %v999_v45  ;;  %v1013_v47 = vsel %vm534_vm3, %v1008_v46, 0 }
 0x809   : > { %1546 = vmatpush3.bf16.msra.mxu1 %v1013_v47 }
 0x80a   : > { %1557 = vmatprep.subr.bf16.mxu1 %v1769_v0 }
 0x812   : > { %v1663_v48 = vpop.eup %1662 }
 0x813   : > { %v1001_v49 = vsel %vm470_vm2, %v1663_v48, 0.0 }
 0x814   : > { %1002 = vadd.xlane.f32.xlu1 %v1001_v49 }
 0x842   : > { %v938_v51 = vpop.f32.mrb[20].mxu1 }
 0x843   : > { %v944_v52 = vadd.f32 %v938_v51, %v2007_v8  ;;  %v1537_v53 = vpop.f32.mrb[21].mxu1 }
 0x844   : > { %v941_v54 = vpop.f32.mrb[22].mxu1 }
 0x845   : > { %v1538_v55 = vpop.f32.mrb[23].mxu1  ;;  %v1436_v54 = vld [vmem:[%s2146_s9] ss:$0 sm:$0xff] }
 0x8a1   : > { %v1003_v56 = vpop.xlane.xlu1 %1002 }
 0x8a2   : > { %1664 = vrcp.f32 %v1003_v56  ;;  %v1437_v56 = vld [vmem:[%s2147_s10] ss:$0 sm:$0xff] }
 0x8ac   : > { %v1665_v57 = vpop.eup %1664 }
 0x8ad   : > { %v1005_v58 = vmul.f32 %v1665_v57, %v1663_v48 }
 0x8af   : > { %v1006_v59 = vpack.c.bf16 %v1005_v58, %v1005_v58 }
 0x8b1   : > { %1548 = vmatmul.mubr.msk.bf16.vlgmr.msra.gmra.mrb[24].mxu1 %vm470_vm2, %v1006_v59 }
 0x8b2   : > { %1561 = vmatprep.mubr.msk.bf16.mxu1 %vm1770_vm0, %v1769_v0  ;;  %1558 = vmatpush3.bf16.msra.mxu1 %v1644_v16 }
 0x8b3   : > { %1559 = vmatprep.subr.bf16.mxu1 %v1769_v0 }
 0x8b6   : > { %1560 = vmatpush3.bf16.msra.mxu1 %v1645_v17 }
 0x984   : > { %v1049_v60 = vpop.f32.mrb[24].mxu1 }
 0x985   : > { %v1055_v61 = vpack.c.bf16 %v1049_v60, %v1049_v60  ;;  %v1549_v62 = vpop.f32.mrb[25].mxu1 }
 0x986   : > { %v1052_v63 = vpop.f32.mrb[26].mxu1 }
 0x987   : > { %v1550_v1 = vpop.f32.mrb[27].mxu1  ;;  %1554 = vmatmul.mubr.msk.bf16.vlgmr.msra.gmra.mrb[20].mxu0 %vm470_vm2, %v1055_v61 }
 0x988   : > { %1573 = vmatprep.mubr.msk.bf16.mxu0 %vm1770_vm0, %v1769_v0 }
 0xa5a   : > { %v1098_v2 = vpop.f32.mrb[20].mxu0 }
 0xa5b   : > { %v1104_v4 = vadd.f32 %v1098_v2, %v944_v52  ;;  %v1555_v5 = vpop.f32.mrb[21].mxu0 }
 0xa5c   : > { %v1101_v7 = vpop.f32.mrb[22].mxu0 }
 0xa5d   : > { %v1556_v8 = vpop.f32.mrb[23].mxu0  ;;  %v1105_v9 = vadd.f32 %v1104_v4, %v1943_v3  ;;  %v1646_v3 = vld [vmem:[%s2142_s5] sm:$0xff]  }
 0xa5e   : > { %1566 = vmatpush3.bf16.msra.mxu0 %v1646_v3 }
 0xa5f   : > { %v1106_v10 = vsel %vm422_vm1, %v1105_v9, 0.0  ;;  %1567 = vmatprep.subr.bf16.mxu0 %v1769_v0 }
 0xa60   : > { %1107 = vadd.xlane.f32.xlu1 %v1106_v10 }
 0xa62   : > { %1568 = vmatpush3.bf16.msra.mxu0 %v1647_v18 }
 0xa63   : > { %1569 = vmatprep.subr.bf16.mxu0 %v1769_v0 }
 0xa66   : > { %1570 = vmatpush3.bf16.msra.mxu0 %v1648_v29 }
 0xa67   : > { %1571 = vmatprep.subr.bf16.mxu0 %v1769_v0  ;;  %v1430_v0 = vld [vmem:[%s2143_s6] ss:$0 sm:$0xff] }
 0xa6a   : > { %1572 = vmatpush3.bf16.msra.mxu0 %v1649_v30 }
 0xaed   : > { %v1108_v11 = vpop.xlane.xlu1 %1107 }
 0xaee   : > { %v1110_v12 = vmul.f32 0.03125, %v1108_v11 }
 0xaf0   : > { %v1111_v13 = vsub.f32 %v1105_v9, %v1110_v12 }
 0xaf2   : > { %v1112_v14 = vmul.f32 %v1111_v13, %v1111_v13 }
 0xaf4   : > { %v1113_v15 = vsel %vm422_vm1, %v1112_v14, 0.0 }
 0xaf5   : > { %1114 = vadd.xlane.f32.xlu1 %v1113_v15 }
 0xb82   : > { %v1115_v19 = vpop.xlane.xlu1 %1114 }
 0xb83   : > { %v1116_v20 = vmul.f32 0.03125, %v1115_v19 }
 0xb85   : > { %v1117_v21 = vadd.f32 1e-05, %v1116_v20 }
 0xb87   : > { %1666 = vrsqrt.f32 %v1117_v21 }
 0xb91   : > { %v1667_v22 = vpop.eup %1666 }
 0xb92   : > { %v1119_v24 = vmul.f32 %v1667_v22, %v1111_v13 }
 0xb94   : > { %v1126_v26 = vmul.f32 %v1424_v23, %v1119_v24 }
 0xb96   : > { %v1133_v27 = vadd.f32 %v1425_v25, %v1126_v26 }
 0xb98   : > { %v1134_v28 = vpack.c.bf16 %v1133_v27, %v1133_v27 }
 0xb9a   : > { %1562 = vmatmul.mubr.msk.bf16.vlgmr.msra.gmra.mrb[28].mxu1 %vm422_vm1, %v1134_v28 }
 0xc6d   : > { %v1194_v32 = vpop.f32.mrb[28].mxu1 }
 0xc6e   : > { %v1195_v33 = vadd.f32 %v1426_v31, %v1194_v32  ;;  %v1563_v34 = vpop.f32.mrb[29].mxu1 }
 0xc6f   : > { %v1197_v35 = vpop.f32.mrb[30].mxu1 }
 0xc70   : > { %v1200_v36 = vmax.f32 %v1195_v33, 0.0  ;;  %v1564_v37 = vpop.f32.mrb[31].mxu1 }
 0xc72   : > { %v1201_v38 = vpack.c.bf16 %v1200_v36, %v1200_v36 }
 0xc74   : > { %1574 = vmatmul.mubr.msk.bf16.vlgmr.msra.gmra.mrb[24].mxu0 %vm1240_vm4, %v1201_v38 }
 0xd47   : > { %v1278_v39 = vpop.f32.mrb[24].mxu0 }
 0xd48   : > { %v1279_v40 = vadd.f32 %v1430_v0, %v1278_v39  ;;  %v1575_v41 = vpop.f32.mrb[25].mxu0 }
 0xd49   : > { %v1281_v42 = vpop.f32.mrb[26].mxu0 }
 0xd4a   : > { %v1576_v43 = vpop.f32.mrb[27].mxu0  ;;  %v1284_v44 = vadd.f32 %v1279_v40, %v1133_v27 }
 0xd4c   : > { %v1285_v45 = vsel %vm422_vm1, %v1284_v44, 0.0 }
 0xd4d   : > { %1286 = vadd.xlane.f32.xlu1 %v1285_v45 }
 0xdda   : > { %v1287_v46 = vpop.xlane.xlu1 %1286 }
 0xddb   : > { %v1288_v47 = vmul.f32 0.03125, %v1287_v46 }
 0xddd   : > { %v1289_v48 = vsub.f32 %v1284_v44, %v1288_v47 }
 0xddf   : > { %v1290_v49 = vmul.f32 %v1289_v48, %v1289_v48 }
 0xde1   : > { %v1291_v50 = vsel %vm422_vm1, %v1290_v49, 0.0 }
 0xde2   : > { %1292 = vadd.xlane.f32.xlu1 %v1291_v50 }
 0xe6f   : > { %v1293_v6 = vpop.xlane.xlu1 %1292 }
 0xe70   : > { %v1294_v51 = vmul.f32 0.03125, %v1293_v6 }
 0xe72   : > { %v1295_v52 = vadd.f32 1e-05, %v1294_v51 }
 0xe74   : > { %1668 = vrsqrt.f32 %v1295_v52 }
 0xe7e   : > { %v1669_v53 = vpop.eup %1668 }
 0xe7f   : > { %v1297_v55 = vmul.f32 %v1669_v53, %v1289_v48 }
 0xe81   : > { %v1304_v57 = vmul.f32 %v1436_v54, %v1297_v55 }
 0xe83   : > { %v1311_v58 = vadd.f32 %v1437_v56, %v1304_v57 }
 0xe85   : > { %1312 = vst.msk [vmem:[%s392_s14] sm:$0xff] %vm422_vm1, %v1311_v58 }
 0xe86   : > { %1711 = shalt.err (!%p1708_p7)
}
 0xe87   : > { %s1712_s26 = scalar_lea.hbm %s2094_s0, 128  ;;  %s1716_s14 = scalar_lea.hbm %s2148_s11, 256 }
 0xe88   : > { %p1713_p8 = scmp.ne.s32.totalorder %s2094_s0, %s1712_s26  ;;  %p1717_p1 = scmp.lt.u32.totalorder %s2094_s0, %s2148_s11 }
 0xe89   : > { %p1718_p0 = scmp.lt.u32.totalorder %s1716_s14, %s1712_s26  ;;  %p1720_p6 = scmp.lt.u32.totalorder %s1712_s26, %s2094_s0 }
 0xe8a   : > { %p1714_p11 = pnand %p1713_p8, %p2162_p9 }
 0xe8b   : > { %p1719_p5 = por %p1718_p0, %p1717_p1 }
 0xe8c   : > { %p1715_p13 = pneg %p1714_p11 }
 0xe8d   : > { %p1721_p10 = por %p1720_p6, %p1719_p5 }
 0xe8f   : > { %p1722_p12 = pnand %p1721_p10, %p1715_p13 }
 0xe91   : > { %1725 = shalt.err (!%p1722_p12)
}
 0xe92   : > { %1581 = dma.vmem_to_hbm [thread:$0]  (%p2162_p9), %s2096_s15, 128, %s2094_s0, %s1314_s12  }
 0xe93 PF: > { %p1593_p2 = scmp.ge.s32.totalorder %s1764_s20, 2  ;;  %s1339_s13 = sand.u32 1, %s1752_s17  }
 0xe94   : > { %p2163_p3 = scmp.ne.s32.totalorder %s2155_s28, 0  ;;  %s1340_s21 = scalar_lea.sflag [#allocation4], %s1339_s13 }
 0xe96   : > { %p1588_p4 = pnand %p1593_p2, %p2163_p3 }
 0xe98   : > { %1747 = dma.done.wait (!%p1588_p4), %s1340_s21, 128  }
 0xe99   : > { %1749 = vsyncadd (!%p1588_p4), %s1340_s21, 4294967168  ;;  %s2164_s29 = sld [smem:[#allocation8_spill]]  ;;  %p22_p7 = scmp.ge.s32.totalorder %s1868_s23, 4  }
 0xe9a   : > { %s2165_s17 = smov %s1756_s18  ;;  %s2166_s18 = smov %s1760_s19 }
 0xe9b   : > { %s2168_s20 = smov %s1868_s23  ;;  %24 = sbr.rel (!%p22_p7) target bundleno = 6 (0x6), region = 107 }
 0xe9f   : > { %s2167_s19 = smov %s2164_s29 }
 0xea2   :  { %1345 = vsyncpa [#allocation3], 1 }
 0xea3   :  { %1347 = vsyncpa [#allocation3 + $0x1], 1 }
 0xea4   :  { %1348 = vsyncpa [#allocation4], 1 }
 0xea5   :  { %1350 = vsyncpa [#allocation4 + $0x1], 1 }

</bundles_post_ra>
